<compile_context>
chip_gen: v5e
topology: v5e:2x2
jax: 0.10.0
libtpu: 0.0.40
codegen_flags: <defaults>
</compile_context>

<pallas_src>
import functools
import math

import jax
import jax.numpy as jnp
import numpy as np
from jax import lax
from jax.experimental import pallas as pl
from jax.experimental.pallas import tpu as pltpu

_LANE = 128


def fixed_padding_amounts(kernel_size: int, dilation: int):
    kernel_size_effective = kernel_size + (kernel_size - 1) * (dilation - 1)
    pad_total = kernel_size_effective - 1
    pad_beg = pad_total // 2
    pad_end = pad_total - pad_beg
    return pad_beg, pad_end


def _round_up(x, m):
    return (x + m - 1) // m * m


def _choose_row_tile(H, Wp, W, Cin_p, Cout_p, K, halo,
                     budget_bytes=32 * 1024 * 1024, dtype_bytes=4):
    """Largest divisor of H whose (double-buffered) working set fits the budget."""
    weights = K * K * Cin_p * Cout_p * dtype_bytes          # resident fused weights
    for th in range(H, 0, -1):
        if H % th:
            continue
        in_bytes = 2 * (th + halo) * Wp * Cin_p * dtype_bytes   # 2 halo-slab buffers
        out_bytes = 2 * th * W * Cout_p * dtype_bytes           # pipelined output
        acc_bytes = th * W * Cout_p * 4                         # f32 accumulator
        if weights + in_bytes + out_bytes + acc_bytes <= budget_bytes:
            return th
    return 1


def _sepconv_kernel(x_hbm, fw_ref, o_ref, x_buf, sem, *,
                    K, dilation, TH, use_bf16):
    # x_hbm : (N, Hp, Wp, Cin_p)   padded input, left in HBM (manual DMA)
    # fw_ref: (K*K, Cin_p, Cout_p) fused depthwise*pointwise weights (resident)
    # o_ref : (1, TH, W, Cout_p)   output row tile (auto-pipelined)
    # x_buf : (2, TH+halo, Wp, Cin_p) VMEM double buffer for the input slab
    # sem   : DMA semaphores, one per buffer slot
    n = pl.program_id(0)
    j = pl.program_id(1)
    n_h_tiles = pl.num_programs(1)

    halo = (K - 1) * dilation
    rows = TH + halo
    W = o_ref.shape[2]
    Cin = x_buf.shape[3]
    Cout = o_ref.shape[3]

    slot = j % 2

    def start_fetch(tile_idx, slot_idx):
        row0 = tile_idx * TH
        if TH % 8 == 0:
            row0 = pl.multiple_of(row0, 8)
        pltpu.make_async_copy(
            x_hbm.at[n, pl.ds(row0, rows)],
            x_buf.at[slot_idx],
            sem.at[slot_idx],
        ).start()

    # Prime the pipeline for the first row tile of this image.
    @pl.when(j == 0)
    def _():
        start_fetch(0, slot)

    # Wait for this tile's slab (started just above at j==0, else prefetched at j-1).
    pltpu.make_async_copy(
        x_hbm.at[n, pl.ds(0, rows)], x_buf.at[slot], sem.at[slot]
    ).wait()

    # Prefetch the next row tile while computing this one.
    @pl.when(j + 1 < n_h_tiles)
    def _():
        start_fetch(j + 1, 1 - slot)

    compute_dtype = jnp.bfloat16 if use_bf16 else jnp.float32

    # K*K accumulated MXU matmuls; taps are read straight from the VMEM ref.
    acc = jnp.zeros((TH * W, Cout), jnp.float32)
    for ky in range(K):
        for kx in range(K):
            tap = x_buf[slot,
                        ky * dilation:ky * dilation + TH,
                        kx * dilation:kx * dilation + W, :]
            tap2d = tap.astype(compute_dtype).reshape(TH * W, Cin)
            fw = fw_ref[ky * K + kx].astype(compute_dtype)     # (Cin, Cout)
            acc = acc + jnp.dot(tap2d, fw,
                                preferred_element_type=jnp.float32)

    o_ref[0] = acc.reshape(TH, W, Cout).astype(o_ref.dtype)


def separable_conv2d(x_nchw, dw_weight, pw_weight, *, kernel_size=3,
                     stride=1, dilation=1, row_tile=None, use_bf16=False,
                     vmem_budget_bytes=32 * 1024 * 1024):
    """Forward pass of SeparabelConv2d (fixed_padding -> depthwise -> pointwise).

    x_nchw:    (N, Cin, H, W)
    dw_weight: (Cin, 1, K, K)     depthwise conv weight (PyTorch layout)
    pw_weight: (Cout, Cin, 1, 1)  pointwise conv weight (PyTorch layout)
    returns    (N, Cout, H, W)
    """
    # TODO(synk): stride > 1 not implemented (module default is stride=1).
    assert stride == 1, "only stride=1 supported in this kernel"
    N, Cin, H, W = x_nchw.shape
    K = kernel_size
    Cout = pw_weight.shape[0]

    pad_beg, pad_end = fixed_padding_amounts(K, dilation)
    halo = pad_beg + pad_end                      # == (K - 1) * dilation

    Cin_p = _round_up(Cin, _LANE)
    Cout_p = _round_up(Cout, _LANE)

    # --- glue: NCHW -> NHWC, fixed padding on H/W, channel pad to lane width.
    x_nhwc = jnp.transpose(x_nchw, (0, 2, 3, 1))
    x_pad = jnp.pad(
        x_nhwc,
        ((0, 0), (pad_beg, pad_end), (pad_beg, pad_end), (0, Cin_p - Cin)))
    Hp, Wp = x_pad.shape[1], x_pad.shape[2]

    # --- fold depthwise into pointwise: fused[t, c, o] = dw[t, c] * pw[c, o]
    dw_k = jnp.transpose(dw_weight[:, 0, :, :], (1, 2, 0)).reshape(K * K, Cin)
    pw_k = jnp.transpose(pw_weight[:, :, 0, 0], (1, 0))           # (Cin, Cout)
    fused = dw_k[:, :, None] * pw_k[None, :, :]                   # (K*K, Cin, Cout)
    fused = jnp.pad(fused, ((0, 0), (0, Cin_p - Cin), (0, Cout_p - Cout)))
    fused = fused.astype(jnp.bfloat16 if use_bf16 else jnp.float32)

    # --- row tile (divisor of H, sized against the VMEM budget)
    if row_tile is None:
        TH = _choose_row_tile(H, Wp, W, Cin_p, Cout_p, K, halo,
                              budget_bytes=vmem_budget_bytes)
    else:
        TH = max(d for d in range(1, min(row_tile, H) + 1) if H % d == 0)
    n_h_tiles = H // TH

    kernel = functools.partial(_sepconv_kernel, K=K, dilation=dilation,
                               TH=TH, use_bf16=use_bf16)

    out_nhwc = pl.pallas_call(
        kernel,
        out_shape=jax.ShapeDtypeStruct((N, H, W, Cout_p), x_nchw.dtype),
        grid_spec=pltpu.PrefetchScalarGridSpec(
            num_scalar_prefetch=0,
            grid=(N, n_h_tiles),
            in_specs=[
                pl.BlockSpec(memory_space=pl.ANY),                 # x stays in HBM
                pl.BlockSpec((K * K, Cin_p, Cout_p),
                             lambda n, j: (0, 0, 0)),              # resident weights
            ],
            out_specs=pl.BlockSpec((1, TH, W, Cout_p),
                                   lambda n, j: (n, j, 0, 0)),
            scratch_shapes=[
                pltpu.VMEM((2, TH + halo, Wp, Cin_p), x_pad.dtype),
                pltpu.SemaphoreType.DMA((2,)),
            ]),
        compiler_params=pltpu.CompilerParams(
            dimension_semantics=("parallel", "arbitrary"),
            vmem_limit_bytes=48 * 1024 * 1024),
    )(x_pad, fused)

    out = out_nhwc[..., :Cout]
    return jnp.transpose(out, (0, 3, 1, 2))       # back to NCHW


def _reference(x_nchw, dw_weight, pw_weight, *, kernel_size=3, dilation=1):
    """Pure-JAX reference matching the PyTorch forward."""
    pad_beg, pad_end = fixed_padding_amounts(kernel_size, dilation)
    Cin = x_nchw.shape[1]
    x_pad = jnp.pad(x_nchw,
                    ((0, 0), (0, 0), (pad_beg, pad_end), (pad_beg, pad_end)))
    y = lax.conv_general_dilated(
        x_pad, dw_weight, window_strides=(1, 1), padding="VALID",
        rhs_dilation=(dilation, dilation), feature_group_count=Cin,
        dimension_numbers=("NCHW", "OIHW", "NCHW"))
    y = lax.conv_general_dilated(
        y, pw_weight, window_strides=(1, 1), padding="VALID",
        dimension_numbers=("NCHW", "OIHW", "NCHW"))
    return y


if __name__ == "__main__":
    key = jax.random.PRNGKey(0)
    k_x, k_dw, k_pw = jax.random.split(key, 3)

    N, Cin, Cout, H, W, K = 2, 4, 8, 16, 16, 3

    x = jax.random.normal(k_x, (N, Cin, H, W), jnp.float32)

    # Deterministic "Kaiming-uniform-like" init (shapes match nn.Conv2d weights).
    fan_dw = 1 * K * K
    bound_dw = 1.0 / math.sqrt(fan_dw)
    dw_weight = jax.random.uniform(k_dw, (Cin, 1, K, K), jnp.float32,
                                   -bound_dw, bound_dw)
    fan_pw = Cin * 1 * 1
    bound_pw = 1.0 / math.sqrt(fan_pw)
    pw_weight = jax.random.uniform(k_pw, (Cout, Cin, 1, 1), jnp.float32,
                                   -bound_pw, bound_pw)

    # Case 1: dilation=1, row_tile=8 -> 2 H-tiles per image (exercises the
    # halo slicing and the double-buffered prefetch path).
    out = separable_conv2d(x, dw_weight, pw_weight,
                           kernel_size=K, stride=1, dilation=1, row_tile=8)
    out = jax.block_until_ready(out)
    ref = _reference(x, dw_weight, pw_weight, kernel_size=K, dilation=1)
    np.testing.assert_allclose(np.asarray(out), np.asarray(ref),
                               rtol=1e-5, atol=2e-5)

    # Case 2: dilation=2 (atrous), row_tile=4 -> larger halo, 4 H-tiles.
    out2 = separable_conv2d(x, dw_weight, pw_weight,
                            kernel_size=K, stride=1, dilation=2, row_tile=4)
    out2 = jax.block_until_ready(out2)
    ref2 = _reference(x, dw_weight, pw_weight, kernel_size=K, dilation=2)
    np.testing.assert_allclose(np.asarray(out2), np.asarray(ref2),
                               rtol=1e-5, atol=2e-5)

    print("KERNEL_OK")
</pallas_src>

<mosaic_0001>
module attributes {stable_mosaic.version = 11 : i64} {
  func.func @_sepconv_kernel(%arg0: i32, %arg1: i32, %arg2: memref<2x18x18x128xf32, #tpu.memory_space<any>>, %arg3: memref<9x128x128xf32, #tpu.memory_space<vmem>>, %arg4: memref<1x8x16x128xf32, #tpu.memory_space<vmem>>, %arg5: memref<2x10x18x128xf32, #tpu.memory_space<vmem>>, %arg6: memref<2x!tpu.dma_semaphore, #tpu.memory_space<semaphore_mem>>) attributes {dimension_semantics = [#tpu.dimension_semantics<parallel>, #tpu.dimension_semantics<arbitrary>], iteration_bounds = array<i64: 2, 2>, scalar_prefetch = 0 : i64, scratch_operands = 2 : i64, tpu.core_type = #tpu.core_type<tc>, window_params = [{}, {pipeline_mode = #tpu.pipeline_mode<synchronous>, transform_indices = @transform_1, window_bounds = array<i64: 9, 128, 128>}, {transform_indices = @transform_2, window_bounds = array<i64: 1, 8, 16, 128>}]} {
    %c2_i32 = arith.constant 2 : i32
    %c0_i32 = arith.constant 0 : i32
    %0 = arith.cmpi eq, %c2_i32, %c0_i32 : i32
    %c1_i32 = arith.constant 1 : i32
    %1 = arith.select %0, %c1_i32, %c2_i32 : i32
    %2 = arith.remsi %arg1, %1 : i32
    %c0_i32_0 = arith.constant 0 : i32
    %3 = arith.cmpi ne, %2, %c0_i32_0 : i32
    %c0_i32_1 = arith.constant 0 : i32
    %4 = arith.cmpi slt, %2, %c0_i32_1 : i32
    %c0_i32_2 = arith.constant 0 : i32
    %5 = arith.cmpi slt, %1, %c0_i32_2 : i32
    %6 = arith.xori %4, %5 : i1
    %7 = arith.andi %6, %3 : i1
    %8 = arith.addi %2, %1 : i32
    %9 = arith.select %7, %8, %2 : i32
    %c0_i32_3 = arith.constant 0 : i32
    %10 = arith.cmpi eq, %arg1, %c0_i32_3 : i32
    %11 = arith.extui %10 : i1 to i32
    %c0_i32_4 = arith.constant 0 : i32
    %12 = arith.cmpi ne, %11, %c0_i32_4 : i32
    scf.if %12 {
      %c0_i32_72 = arith.constant 0 : i32
      %100 = tpu.assume_multiple %c0_i32_72, 8 : i32
      %c0_i32_73 = arith.constant 0 : i32
      %c0_i32_74 = arith.constant 0 : i32
      %101 = tpu.memref_slice %arg2[%arg0, %100, %c0_i32_73, %c0_i32_74] : memref<2x18x18x128xf32, #tpu.memory_space<any>> -> memref<1x10x18x128xf32, #tpu.memory_space<any>>
      %102 = tpu.memref_squeeze %101 : memref<1x10x18x128xf32, #tpu.memory_space<any>> -> memref<10x18x128xf32, #tpu.memory_space<any>>
      %c0_i32_75 = arith.constant 0 : i32
      %c0_i32_76 = arith.constant 0 : i32
      %c0_i32_77 = arith.constant 0 : i32
      %103 = tpu.memref_slice %arg5[%9, %c0_i32_75, %c0_i32_76, %c0_i32_77] : memref<2x10x18x128xf32, #tpu.memory_space<vmem>> -> memref<1x10x18x128xf32, #tpu.memory_space<vmem>>
      %104 = tpu.memref_squeeze %103 : memref<1x10x18x128xf32, #tpu.memory_space<vmem>> -> memref<10x18x128xf32, #tpu.memory_space<vmem>>
      %105 = tpu.memref_slice %arg6[%9] : memref<2x!tpu.dma_semaphore, #tpu.memory_space<semaphore_mem>> -> memref<1x!tpu.dma_semaphore, #tpu.memory_space<semaphore_mem>>
      %106 = tpu.memref_squeeze %105 : memref<1x!tpu.dma_semaphore, #tpu.memory_space<semaphore_mem>> -> memref<!tpu.dma_semaphore, #tpu.memory_space<semaphore_mem>>
      tpu.enqueue_dma source(%102 : memref<10x18x128xf32, #tpu.memory_space<any>>) target(%104 : memref<10x18x128xf32, #tpu.memory_space<vmem>>) target_semaphore(%106 : memref<!tpu.dma_semaphore, #tpu.memory_space<semaphore_mem>>)
    } else {
    }
    %c0_i32_5 = arith.constant 0 : i32
    %c0_i32_6 = arith.constant 0 : i32
    %c0_i32_7 = arith.constant 0 : i32
    %13 = tpu.memref_slice %arg2[%arg0, %c0_i32_5, %c0_i32_6, %c0_i32_7] : memref<2x18x18x128xf32, #tpu.memory_space<any>> -> memref<1x10x18x128xf32, #tpu.memory_space<any>>
    %14 = tpu.memref_squeeze %13 : memref<1x10x18x128xf32, #tpu.memory_space<any>> -> memref<10x18x128xf32, #tpu.memory_space<any>>
    %c0_i32_8 = arith.constant 0 : i32
    %c0_i32_9 = arith.constant 0 : i32
    %c0_i32_10 = arith.constant 0 : i32
    %15 = tpu.memref_slice %arg5[%9, %c0_i32_8, %c0_i32_9, %c0_i32_10] : memref<2x10x18x128xf32, #tpu.memory_space<vmem>> -> memref<1x10x18x128xf32, #tpu.memory_space<vmem>>
    %16 = tpu.memref_squeeze %15 : memref<1x10x18x128xf32, #tpu.memory_space<vmem>> -> memref<10x18x128xf32, #tpu.memory_space<vmem>>
    %17 = tpu.memref_slice %arg6[%9] : memref<2x!tpu.dma_semaphore, #tpu.memory_space<semaphore_mem>> -> memref<1x!tpu.dma_semaphore, #tpu.memory_space<semaphore_mem>>
    %18 = tpu.memref_squeeze %17 : memref<1x!tpu.dma_semaphore, #tpu.memory_space<semaphore_mem>> -> memref<!tpu.dma_semaphore, #tpu.memory_space<semaphore_mem>>
    tpu.wait_dma2 semaphore(%18 : memref<!tpu.dma_semaphore, #tpu.memory_space<semaphore_mem>>) src(%14 : memref<10x18x128xf32, #tpu.memory_space<any>>) dst(%16 : memref<10x18x128xf32, #tpu.memory_space<vmem>>)
    %c1_i32_11 = arith.constant 1 : i32
    %19 = arith.addi %arg1, %c1_i32_11 : i32
    %c2_i32_12 = arith.constant 2 : i32
    %20 = arith.cmpi slt, %19, %c2_i32_12 : i32
    %21 = arith.extui %20 : i1 to i32
    %c0_i32_13 = arith.constant 0 : i32
    %22 = arith.cmpi ne, %21, %c0_i32_13 : i32
    scf.if %22 {
      %c1_i32_72 = arith.constant 1 : i32
      %100 = arith.addi %arg1, %c1_i32_72 : i32
      %c1_i32_73 = arith.constant 1 : i32
      %101 = arith.subi %c1_i32_73, %9 : i32
      %c8_i32 = arith.constant 8 : i32
      %102 = arith.muli %100, %c8_i32 : i32
      %103 = tpu.assume_multiple %102, 8 : i32
      %c0_i32_74 = arith.constant 0 : i32
      %c0_i32_75 = arith.constant 0 : i32
      %104 = tpu.memref_slice %arg2[%arg0, %103, %c0_i32_74, %c0_i32_75] : memref<2x18x18x128xf32, #tpu.memory_space<any>> -> memref<1x10x18x128xf32, #tpu.memory_space<any>>
      %105 = tpu.memref_squeeze %104 : memref<1x10x18x128xf32, #tpu.memory_space<any>> -> memref<10x18x128xf32, #tpu.memory_space<any>>
      %c0_i32_76 = arith.constant 0 : i32
      %c0_i32_77 = arith.constant 0 : i32
      %c0_i32_78 = arith.constant 0 : i32
      %106 = tpu.memref_slice %arg5[%101, %c0_i32_76, %c0_i32_77, %c0_i32_78] : memref<2x10x18x128xf32, #tpu.memory_space<vmem>> -> memref<1x10x18x128xf32, #tpu.memory_space<vmem>>
      %107 = tpu.memref_squeeze %106 : memref<1x10x18x128xf32, #tpu.memory_space<vmem>> -> memref<10x18x128xf32, #tpu.memory_space<vmem>>
      %108 = tpu.memref_slice %arg6[%101] : memref<2x!tpu.dma_semaphore, #tpu.memory_space<semaphore_mem>> -> memref<1x!tpu.dma_semaphore, #tpu.memory_space<semaphore_mem>>
      %109 = tpu.memref_squeeze %108 : memref<1x!tpu.dma_semaphore, #tpu.memory_space<semaphore_mem>> -> memref<!tpu.dma_semaphore, #tpu.memory_space<semaphore_mem>>
      tpu.enqueue_dma source(%105 : memref<10x18x128xf32, #tpu.memory_space<any>>) target(%107 : memref<10x18x128xf32, #tpu.memory_space<vmem>>) target_semaphore(%109 : memref<!tpu.dma_semaphore, #tpu.memory_space<semaphore_mem>>)
    } else {
    }
    %cst = arith.constant 0.000000e+00 : f32
    %23 = vector.broadcast %cst : f32 to vector<128x128xf32>
    %24 = arith.index_cast %9 : i32 to index
    %c0 = arith.constant 0 : index
    %c0_14 = arith.constant 0 : index
    %c0_15 = arith.constant 0 : index
    %25 = vector.load %arg5[%24, %c0, %c0_14, %c0_15] : memref<2x10x18x128xf32, #tpu.memory_space<vmem>>, vector<1x8x16x128xf32>
    %26 = vector.shape_cast %25 : vector<1x8x16x128xf32> to vector<8x16x128xf32>
    %27 = vector.shape_cast %26 : vector<8x16x128xf32> to vector<128x128xf32>
    %c0_16 = arith.constant 0 : index
    %c0_17 = arith.constant 0 : index
    %c0_18 = arith.constant 0 : index
    %28 = vector.load %arg3[%c0_16, %c0_17, %c0_18] : memref<9x128x128xf32, #tpu.memory_space<vmem>>, vector<1x128x128xf32>
    %29 = vector.shape_cast %28 : vector<1x128x128xf32> to vector<128x128xf32>
    %cst_19 = arith.constant dense<0.000000e+00> : vector<128x128xf32>
    %30 = tpu.matmul %27, %29, %cst_19 {dimension_numbers = #tpu.dot_dimension_numbers<[1], [0], [0], [1], [0, 0, 1, 1], [], []>} : vector<128x128xf32>, vector<128x128xf32>, vector<128x128xf32> -> vector<128x128xf32>
    %31 = arith.addf %23, %30 : vector<128x128xf32>
    %32 = arith.index_cast %9 : i32 to index
    %c0_20 = arith.constant 0 : index
    %c1 = arith.constant 1 : index
    %c0_21 = arith.constant 0 : index
    %33 = vector.load %arg5[%32, %c0_20, %c1, %c0_21] : memref<2x10x18x128xf32, #tpu.memory_space<vmem>>, vector<1x8x16x128xf32>
    %34 = vector.shape_cast %33 : vector<1x8x16x128xf32> to vector<8x16x128xf32>
    %35 = vector.shape_cast %34 : vector<8x16x128xf32> to vector<128x128xf32>
    %c1_22 = arith.constant 1 : index
    %c0_23 = arith.constant 0 : index
    %c0_24 = arith.constant 0 : index
    %36 = vector.load %arg3[%c1_22, %c0_23, %c0_24] : memref<9x128x128xf32, #tpu.memory_space<vmem>>, vector<1x128x128xf32>
    %37 = vector.shape_cast %36 : vector<1x128x128xf32> to vector<128x128xf32>
    %cst_25 = arith.constant dense<0.000000e+00> : vector<128x128xf32>
    %38 = tpu.matmul %35, %37, %cst_25 {dimension_numbers = #tpu.dot_dimension_numbers<[1], [0], [0], [1], [0, 0, 1, 1], [], []>} : vector<128x128xf32>, vector<128x128xf32>, vector<128x128xf32> -> vector<128x128xf32>
    %39 = arith.addf %31, %38 : vector<128x128xf32>
    %40 = arith.index_cast %9 : i32 to index
    %c0_26 = arith.constant 0 : index
    %c2 = arith.constant 2 : index
    %c0_27 = arith.constant 0 : index
    %41 = vector.load %arg5[%40, %c0_26, %c2, %c0_27] : memref<2x10x18x128xf32, #tpu.memory_space<vmem>>, vector<1x8x16x128xf32>
    %42 = vector.shape_cast %41 : vector<1x8x16x128xf32> to vector<8x16x128xf32>
    %43 = vector.shape_cast %42 : vector<8x16x128xf32> to vector<128x128xf32>
    %c2_28 = arith.constant 2 : index
    %c0_29 = arith.constant 0 : index
    %c0_30 = arith.constant 0 : index
    %44 = vector.load %arg3[%c2_28, %c0_29, %c0_30] : memref<9x128x128xf32, #tpu.memory_space<vmem>>, vector<1x128x128xf32>
    %45 = vector.shape_cast %44 : vector<1x128x128xf32> to vector<128x128xf32>
    %cst_31 = arith.constant dense<0.000000e+00> : vector<128x128xf32>
    %46 = tpu.matmul %43, %45, %cst_31 {dimension_numbers = #tpu.dot_dimension_numbers<[1], [0], [0], [1], [0, 0, 1, 1], [], []>} : vector<128x128xf32>, vector<128x128xf32>, vector<128x128xf32> -> vector<128x128xf32>
    %47 = arith.addf %39, %46 : vector<128x128xf32>
    %48 = arith.index_cast %9 : i32 to index
    %c1_32 = arith.constant 1 : index
    %c0_33 = arith.constant 0 : index
    %c0_34 = arith.constant 0 : index
    %49 = vector.load %arg5[%48, %c1_32, %c0_33, %c0_34] : memref<2x10x18x128xf32, #tpu.memory_space<vmem>>, vector<1x8x16x128xf32>
    %50 = vector.shape_cast %49 : vector<1x8x16x128xf32> to vector<8x16x128xf32>
    %51 = vector.shape_cast %50 : vector<8x16x128xf32> to vector<128x128xf32>
    %c3 = arith.constant 3 : index
    %c0_35 = arith.constant 0 : index
    %c0_36 = arith.constant 0 : index
    %52 = vector.load %arg3[%c3, %c0_35, %c0_36] : memref<9x128x128xf32, #tpu.memory_space<vmem>>, vector<1x128x128xf32>
    %53 = vector.shape_cast %52 : vector<1x128x128xf32> to vector<128x128xf32>
    %cst_37 = arith.constant dense<0.000000e+00> : vector<128x128xf32>
    %54 = tpu.matmul %51, %53, %cst_37 {dimension_numbers = #tpu.dot_dimension_numbers<[1], [0], [0], [1], [0, 0, 1, 1], [], []>} : vector<128x128xf32>, vector<128x128xf32>, vector<128x128xf32> -> vector<128x128xf32>
    %55 = arith.addf %47, %54 : vector<128x128xf32>
    %56 = arith.index_cast %9 : i32 to index
    %c1_38 = arith.constant 1 : index
    %c1_39 = arith.constant 1 : index
    %c0_40 = arith.constant 0 : index
    %57 = vector.load %arg5[%56, %c1_38, %c1_39, %c0_40] : memref<2x10x18x128xf32, #tpu.memory_space<vmem>>, vector<1x8x16x128xf32>
    %58 = vector.shape_cast %57 : vector<1x8x16x128xf32> to vector<8x16x128xf32>
    %59 = vector.shape_cast %58 : vector<8x16x128xf32> to vector<128x128xf32>
    %c4 = arith.constant 4 : index
    %c0_41 = arith.constant 0 : index
    %c0_42 = arith.constant 0 : index
    %60 = vector.load %arg3[%c4, %c0_41, %c0_42] : memref<9x128x128xf32, #tpu.memory_space<vmem>>, vector<1x128x128xf32>
    %61 = vector.shape_cast %60 : vector<1x128x128xf32> to vector<128x128xf32>
    %cst_43 = arith.constant dense<0.000000e+00> : vector<128x128xf32>
    %62 = tpu.matmul %59, %61, %cst_43 {dimension_numbers = #tpu.dot_dimension_numbers<[1], [0], [0], [1], [0, 0, 1, 1], [], []>} : vector<128x128xf32>, vector<128x128xf32>, vector<128x128xf32> -> vector<128x128xf32>
    %63 = arith.addf %55, %62 : vector<128x128xf32>
    %64 = arith.index_cast %9 : i32 to index
    %c1_44 = arith.constant 1 : index
    %c2_45 = arith.constant 2 : index
    %c0_46 = arith.constant 0 : index
    %65 = vector.load %arg5[%64, %c1_44, %c2_45, %c0_46] : memref<2x10x18x128xf32, #tpu.memory_space<vmem>>, vector<1x8x16x128xf32>
    %66 = vector.shape_cast %65 : vector<1x8x16x128xf32> to vector<8x16x128xf32>
    %67 = vector.shape_cast %66 : vector<8x16x128xf32> to vector<128x128xf32>
    %c5 = arith.constant 5 : index
    %c0_47 = arith.constant 0 : index
    %c0_48 = arith.constant 0 : index
    %68 = vector.load %arg3[%c5, %c0_47, %c0_48] : memref<9x128x128xf32, #tpu.memory_space<vmem>>, vector<1x128x128xf32>
    %69 = vector.shape_cast %68 : vector<1x128x128xf32> to vector<128x128xf32>
    %cst_49 = arith.constant dense<0.000000e+00> : vector<128x128xf32>
    %70 = tpu.matmul %67, %69, %cst_49 {dimension_numbers = #tpu.dot_dimension_numbers<[1], [0], [0], [1], [0, 0, 1, 1], [], []>} : vector<128x128xf32>, vector<128x128xf32>, vector<128x128xf32> -> vector<128x128xf32>
    %71 = arith.addf %63, %70 : vector<128x128xf32>
    %72 = arith.index_cast %9 : i32 to index
    %c2_50 = arith.constant 2 : index
    %c0_51 = arith.constant 0 : index
    %c0_52 = arith.constant 0 : index
    %73 = vector.load %arg5[%72, %c2_50, %c0_51, %c0_52] : memref<2x10x18x128xf32, #tpu.memory_space<vmem>>, vector<1x8x16x128xf32>
    %74 = vector.shape_cast %73 : vector<1x8x16x128xf32> to vector<8x16x128xf32>
    %75 = vector.shape_cast %74 : vector<8x16x128xf32> to vector<128x128xf32>
    %c6 = arith.constant 6 : index
    %c0_53 = arith.constant 0 : index
    %c0_54 = arith.constant 0 : index
    %76 = vector.load %arg3[%c6, %c0_53, %c0_54] : memref<9x128x128xf32, #tpu.memory_space<vmem>>, vector<1x128x128xf32>
    %77 = vector.shape_cast %76 : vector<1x128x128xf32> to vector<128x128xf32>
    %cst_55 = arith.constant dense<0.000000e+00> : vector<128x128xf32>
    %78 = tpu.matmul %75, %77, %cst_55 {dimension_numbers = #tpu.dot_dimension_numbers<[1], [0], [0], [1], [0, 0, 1, 1], [], []>} : vector<128x128xf32>, vector<128x128xf32>, vector<128x128xf32> -> vector<128x128xf32>
    %79 = arith.addf %71, %78 : vector<128x128xf32>
    %80 = arith.index_cast %9 : i32 to index
    %c2_56 = arith.constant 2 : index
    %c1_57 = arith.constant 1 : index
    %c0_58 = arith.constant 0 : index
    %81 = vector.load %arg5[%80, %c2_56, %c1_57, %c0_58] : memref<2x10x18x128xf32, #tpu.memory_space<vmem>>, vector<1x8x16x128xf32>
    %82 = vector.shape_cast %81 : vector<1x8x16x128xf32> to vector<8x16x128xf32>
    %83 = vector.shape_cast %82 : vector<8x16x128xf32> to vector<128x128xf32>
    %c7 = arith.constant 7 : index
    %c0_59 = arith.constant 0 : index
    %c0_60 = arith.constant 0 : index
    %84 = vector.load %arg3[%c7, %c0_59, %c0_60] : memref<9x128x128xf32, #tpu.memory_space<vmem>>, vector<1x128x128xf32>
    %85 = vector.shape_cast %84 : vector<1x128x128xf32> to vector<128x128xf32>
    %cst_61 = arith.constant dense<0.000000e+00> : vector<128x128xf32>
    %86 = tpu.matmul %83, %85, %cst_61 {dimension_numbers = #tpu.dot_dimension_numbers<[1], [0], [0], [1], [0, 0, 1, 1], [], []>} : vector<128x128xf32>, vector<128x128xf32>, vector<128x128xf32> -> vector<128x128xf32>
    %87 = arith.addf %79, %86 : vector<128x128xf32>
    %88 = arith.index_cast %9 : i32 to index
    %c2_62 = arith.constant 2 : index
    %c2_63 = arith.constant 2 : index
    %c0_64 = arith.constant 0 : index
    %89 = vector.load %arg5[%88, %c2_62, %c2_63, %c0_64] : memref<2x10x18x128xf32, #tpu.memory_space<vmem>>, vector<1x8x16x128xf32>
    %90 = vector.shape_cast %89 : vector<1x8x16x128xf32> to vector<8x16x128xf32>
    %91 = vector.shape_cast %90 : vector<8x16x128xf32> to vector<128x128xf32>
    %c8 = arith.constant 8 : index
    %c0_65 = arith.constant 0 : index
    %c0_66 = arith.constant 0 : index
    %92 = vector.load %arg3[%c8, %c0_65, %c0_66] : memref<9x128x128xf32, #tpu.memory_space<vmem>>, vector<1x128x128xf32>
    %93 = vector.shape_cast %92 : vector<1x128x128xf32> to vector<128x128xf32>
    %cst_67 = arith.constant dense<0.000000e+00> : vector<128x128xf32>
    %94 = tpu.matmul %91, %93, %cst_67 {dimension_numbers = #tpu.dot_dimension_numbers<[1], [0], [0], [1], [0, 0, 1, 1], [], []>} : vector<128x128xf32>, vector<128x128xf32>, vector<128x128xf32> -> vector<128x128xf32>
    %95 = arith.addf %87, %94 : vector<128x128xf32>
    %96 = vector.shape_cast %95 : vector<128x128xf32> to vector<8x16x128xf32>
    %c0_68 = arith.constant 0 : index
    %c0_69 = arith.constant 0 : index
    %c0_70 = arith.constant 0 : index
    %c0_71 = arith.constant 0 : index
    %97 = vector.load %arg4[%c0_68, %c0_69, %c0_70, %c0_71] : memref<1x8x16x128xf32, #tpu.memory_space<vmem>>, vector<1x8x16x128xf32>
    %98 = vector.shape_cast %97 : vector<1x8x16x128xf32> to vector<8x16x128xf32>
    %99 = vector.shape_cast %96 : vector<8x16x128xf32> to vector<1x8x16x128xf32>
    tpu.vector_store %arg4[%c0_68, %c0_69, %c0_70, %c0_71], %99 {strides = array<i32>} : memref<1x8x16x128xf32, #tpu.memory_space<vmem>>, vector<1x8x16x128xf32>,
    return
  }
  func.func @transform_1(%arg0: i32, %arg1: i32) -> (i32, i32, i32) {
    %c0_i32 = arith.constant 0 : i32
    %c0_i32_0 = arith.constant 0 : i32
    %c0_i32_1 = arith.constant 0 : i32
    %c0_i32_2 = arith.constant 0 : i32
    return %c0_i32, %c0_i32_0, %c0_i32_1 : i32, i32, i32
  }
  func.func @transform_2(%arg0: i32, %arg1: i32) -> (i32, i32, i32, i32) {
    %c0_i32 = arith.constant 0 : i32
    %c0_i32_0 = arith.constant 0 : i32
    %c0_i32_1 = arith.constant 0 : i32
    return %arg0, %arg1, %c0_i32, %c0_i32_0 : i32, i32, i32, i32
  }
}

</mosaic_0001>

<bundles_post_ra>
// kernel: tpu_custom_call.1
= control target key start
LH: loop header
LB: loop body
LE: loop exit
PB: predicated region body
PF: predicated region fallthrough
CT: control target
= control target key end

     0   :  { %7 = vsyncpa [#allocation5], 0  ;;  %s3120_s0 = inlined_call_operand.vmem [shape: f32[2,18,18,128], index: 0, kind: input, shape index: {}]   ;;  %s3121_s1 = inlined_call_operand.vmem [shape: f32[9,128,128], index: 1, kind: input, shape index: {}]   ;;  %s3122_s2 = inlined_call_operand.hbm [shape: f32[2,16,16,128], index: 2, kind: output, shape index: {}]  }
   0x1   :  { %9 = vsyncpa [#allocation5 + $0x1], 0  ;;  %s2015_s9 = smov 0   ;;  %s2017_s10 = smov 0  }
   0x2   :  { %s2019_s11 = smov 0   ;;  %s2021_s12 = smov 0  }
   0x3   :  { %s2023_s13 = smov 0   ;;  %s2025_s14 = smov 0  }
   0x4   :  { %s2027_s15 = smov 0   ;;  %s2029_s16 = smov 0  }
   0x5 LB: > { %s1475_s17 = sadd.s32 4294967295, %s1996_s16   ;;  %s1476_s18 = sadd.s32 4294967294, %s1996_s16   ;;  %s1996_s16 = sphi %s2029_s16, %s15_s16   ;;  %s1992_s15 = sphi %s2027_s15, %s3131_s15   ;;  %s1988_s14 = sphi %s2025_s14, %s3130_s14   ;;  %s1984_s13 = sphi %s2023_s13, %s3129_s13   ;;  %s1980_s12 = sphi %s2021_s12, %s3128_s12   ;;  %s1976_s11 = sphi %s2019_s11, %s3127_s11   ;;  %s1972_s10 = sphi %s2017_s10, %s3126_s10   ;;  %s1968_s9 = sphi %s2015_s9, %s3125_s9  }
   0x6   : > { %s24_s19 = sadd.s32 1, %s1988_s14  ;;  %s27_s20 = sadd.s32 1, %s1992_s15 }
   0x7   : > { %p25_p0 = scmp.ge.s32.totalorder %s24_s19, 2  ;;  %p67_p1 = scmp.ne.s32.totalorder %s1976_s11, %s1972_s10 }
   0x8   : > { %p68_p2 = scmp.eq.s32.totalorder %s1475_s17, 3  ;;  %p73_p5 = scmp.ne.s32.totalorder %s1972_s10, %s1968_s9 }
   0x9   : > { %s3133_s19 = smov (%p25_p0, %s24_s19), 0  ;;  %s3135_s20 = smov (!%p25_p0, %s27_s20), %s1992_s15 }
   0xa   : > { %s53_s21 = ssub.s32 %s1988_s14, %s3133_s19  ;;  %p2066_p3 = por %p68_p2, %p67_p1 }
   0xb   : > { %p29_p4 = scmp.ge.s32.totalorder %s3135_s20, 2  ;;  %p74_p6 = scmp.eq.s32.totalorder %s1476_s18, 3 }
   0xc   : > { %p1478_p7 = scmp.ge.s32.totalorder %s1996_s16, 1  ;;  %p95_p9 = scmp.lt.s32.totalorder %s1996_s16, 5 }
   0xd   : > { %s3137_s20 = smov (%p29_p4, %s3135_s20), 0  ;;  %p2075_p8 = por %p74_p6, %p73_p5 }
   0xe   : > { %s52_s24 = ssub.s32 %s1992_s15, %s3137_s20  ;;  %s57_s25 = sadd.s32 1, %s1976_s11 }
   0xf   : > { %s54_s26 = sor.u32 %s53_s21, %s52_s24  ;;  %p96_p10 = pnand %p1478_p7, %p95_p9 }
  0x10   : > { %p55_p11 = scmp.eq.s32.totalorder %s54_s26, 0  ;;  %s107_s28 = sand.u32 (!%p96_p10), 1, %s1972_s10  }
  0x11   : > { %99 = sbr.rel (%p96_p10) target bundleno = 563 (0x233), region = 24  ;;  %p111_p12 = scmp.lt.s32.totalorder (!%p96_p10), %s1980_s12, 0 }
  0x12   : > { %s2084_s27 = scalar_select %p55_p11, %s1976_s11, %s57_s25  }
  0x13   : > { %s1479_s29 = sshll.u32 (!%p96_p10), %s107_s28, 7  ;;  %s112_s30 = ssub.s32 (!%p96_p10), 0, %s1980_s12 }
  0x14   : > { %s1480_s3 = smin.u32 (!%p96_p10), %s1980_s12, %s112_s30  ;;  %s2094_s7 = scalar_lea.vmem (!%p96_p10), [#allocation4], %s1479_s29 }
  0x15   : > { %s114_s4 = sand.u32 (!%p96_p10), 1, %s1480_s3   ;;  %p1483_p0 = scmp.ne.s32.totalorder (!%p96_p10), %s1980_s12, 0 }
  0x16   : > { %s115_s5 = ssub.s32 0, %s114_s4  ;;  %s128_s8 = smul.u32 (!%p1483_p0), 432, %s1984_s13 }
  0x17   : > { %s3139_s5 = smov (!%p111_p12, %s115_s5), %s114_s4  ;;  %126 = sbr.rel (%p1483_p0) target bundleno = 61 (0x3d), region = 28 }
  0x18   : > { %p1482_p13 = scmp.lt.s32.totalorder %s3139_s5, 0  ;;  %s121_s6 = sadd.s32 2, %s3139_s5 }
  0x19   : > { %s2102_s24 = scalar_lea.vmem (!%p1483_p0), %s3120_s0, %s128_s8 }
  0x1a   : > { %s3141_s6 = smov (!%p1482_p13, %s121_s6), %s3139_s5 }
  0x1b   : > { %s131_s17 = smul.u32 (!%p1483_p0), 240, %s3141_s6  ;;  %s133_s26 = scalar_lea.sflag (!%p1483_p0), [#allocation3], %s3141_s6 }
  0x1c   : > { %v146_v0 = vld [vmem:[%s2102_s24] sm:$0xff]  ;;  %v148_v1 = vld [vmem:[%s2102_s24 + $0x8] sm:$0xff]  ;;  %v150_v2 = vld [vmem:[%s2102_s24 + $0x18] sm:$0xff] }
  0x1d   : > { %s2107_s25 = scalar_lea.vmem [#allocation2], %s131_s17  ;;  %v152_v3 = vld [vmem:[%s2102_s24 + $0x20] sm:$0xff]  ;;  %v154_v4 = vld [vmem:[%s2102_s24 + $0x30] sm:$0xff]  ;;  %v156_v5 = vld [vmem:[%s2102_s24 + $0x38] sm:$0xff] }
  0x1e   : > { %147 = vst [vmem:[%s2107_s25] sm:$0xff] %v146_v0  ;;  %v158_v6 = vld [vmem:[%s2102_s24 + $0x48] sm:$0xff]  ;;  %v160_v7 = vld [vmem:[%s2102_s24 + $0x50] sm:$0xff]  ;;  %v162_v8 = vld [vmem:[%s2102_s24 + $0x60] sm:$0xff] }
  0x1f   : > { %149 = vst [vmem:[%s2107_s25 + $0x8] sm:$0xff] %v148_v1  ;;  %v164_v9 = vld [vmem:[%s2102_s24 + $0x68] sm:$0xff]  ;;  %v166_v10 = vld [vmem:[%s2102_s24 + $0x78] sm:$0xff]  ;;  %v168_v11 = vld [vmem:[%s2102_s24 + $0x80] sm:$0xff] }
  0x20   : > { %151 = vst [vmem:[%s2107_s25 + $0x18] sm:$0xff] %v150_v2  ;;  %v170_v12 = vld [vmem:[%s2102_s24 + $0x90] sm:$0xff]  ;;  %v172_v13 = vld [vmem:[%s2102_s24 + $0x98] sm:$0xff]  ;;  %v174_v14 = vld [vmem:[%s2102_s24 + $0xa8] sm:$0xff] }
  0x21   : > { %153 = vst [vmem:[%s2107_s25 + $0x20] sm:$0xff] %v152_v3  ;;  %v176_v15 = vld [vmem:[%s2102_s24 + $0xb0] sm:$0xff]  ;;  %v178_v16 = vld [vmem:[%s2102_s24 + $0xc0] sm:$0xff]  ;;  %v180_v17 = vld [vmem:[%s2102_s24 + $0xc8] sm:$0xff] }
  0x22   : > { %155 = vst [vmem:[%s2107_s25 + $0x30] sm:$0xff] %v154_v4  ;;  %v182_v18 = vld [vmem:[%s2102_s24 + $0xd8] sm:$0xff]  ;;  %v184_v19 = vld [vmem:[%s2102_s24 + $0xe0] sm:$0xff]  ;;  %v1484_v20 = vld [vmem:[%s2102_s24 + $0x10] sm:$0x3] }
  0x23   : > { %157 = vst [vmem:[%s2107_s25 + $0x38] sm:$0xff] %v156_v5  ;;  %v1486_v21 = vld [vmem:[%s2102_s24 + $0x28] sm:$0x3]  ;;  %v1488_v22 = vld [vmem:[%s2102_s24 + $0x40] sm:$0x3] }
  0x24   : > { %159 = vst [vmem:[%s2107_s25 + $0x48] sm:$0xff] %v158_v6  ;;  %v1490_v23 = vld [vmem:[%s2102_s24 + $0x58] sm:$0x3]  ;;  %v1492_v24 = vld [vmem:[%s2102_s24 + $0x70] sm:$0x3] }
  0x25   : > { %161 = vst [vmem:[%s2107_s25 + $0x50] sm:$0xff] %v160_v7  ;;  %v1494_v25 = vld [vmem:[%s2102_s24 + $0x88] sm:$0x3]  ;;  %v1496_v26 = vld [vmem:[%s2102_s24 + $0xa0] sm:$0x3] }
  0x26   : > { %163 = vst [vmem:[%s2107_s25 + $0x60] sm:$0xff] %v162_v8  ;;  %v1498_v27 = vld [vmem:[%s2102_s24 + $0xb8] sm:$0x3]  ;;  %v1500_v28 = vld [vmem:[%s2102_s24 + $0xd0] sm:$0x3] }
  0x27   : > { %165 = vst [vmem:[%s2107_s25 + $0x68] sm:$0xff] %v164_v9  ;;  %v1502_v29 = vld [vmem:[%s2102_s24 + $0xe8] sm:$0x3] }
  0x28   : > { %167 = vst [vmem:[%s2107_s25 + $0x78] sm:$0xff] %v166_v10 }
  0x29   : > { %169 = vst [vmem:[%s2107_s25 + $0x80] sm:$0xff] %v168_v11 }
  0x2a   : > { %171 = vst [vmem:[%s2107_s25 + $0x90] sm:$0xff] %v170_v12 }
  0x2b   : > { %173 = vst [vmem:[%s2107_s25 + $0x98] sm:$0xff] %v172_v13 }
  0x2c   : > { %175 = vst [vmem:[%s2107_s25 + $0xa8] sm:$0xff] %v174_v14 }
  0x2d   : > { %177 = vst [vmem:[%s2107_s25 + $0xb0] sm:$0xff] %v176_v15 }
  0x2e   : > { %179 = vst [vmem:[%s2107_s25 + $0xc0] sm:$0xff] %v178_v16 }
  0x2f   : > { %181 = vst [vmem:[%s2107_s25 + $0xc8] sm:$0xff] %v180_v17 }
  0x30   : > { %183 = vst [vmem:[%s2107_s25 + $0xd8] sm:$0xff] %v182_v18 }
  0x31   : > { %185 = vst [vmem:[%s2107_s25 + $0xe0] sm:$0xff] %v184_v19 }
  0x32   : > { %1485 = vst [vmem:[%s2107_s25 + $0x10] sm:$0x3] %v1484_v20 }
  0x33   : > { %1487 = vst [vmem:[%s2107_s25 + $0x28] sm:$0x3] %v1486_v21 }
  0x34   : > { %1489 = vst [vmem:[%s2107_s25 + $0x40] sm:$0x3] %v1488_v22 }
  0x35   : > { %1491 = vst [vmem:[%s2107_s25 + $0x58] sm:$0x3] %v1490_v23 }
  0x36   : > { %1493 = vst [vmem:[%s2107_s25 + $0x70] sm:$0x3] %v1492_v24 }
  0x37   : > { %1495 = vst [vmem:[%s2107_s25 + $0x88] sm:$0x3] %v1494_v25 }
  0x38   : > { %1497 = vst [vmem:[%s2107_s25 + $0xa0] sm:$0x3] %v1496_v26 }
  0x39   : > { %1499 = vst [vmem:[%s2107_s25 + $0xb8] sm:$0x3] %v1498_v27 }
  0x3a   : > { %1501 = vst [vmem:[%s2107_s25 + $0xd0] sm:$0x3] %v1500_v28 }
  0x3b   : > { %1503 = vst [vmem:[%s2107_s25 + $0xe8] sm:$0x3] %v1502_v29 }
  0x3c   : > { %219 = vsyncadd %s133_s26, 2880 }
  0x3d PF: > { %s220_s29 = scalar_lea.sflag [#allocation3], %s3141_s6 }
  0x3e   : > { %1960 = dma.done.wait %s220_s29, 2880 }
  0x3f   : > { %1961 = vsyncadd %s220_s29, 4294964416  ;;  %s225_s30 = sadd.s32 1, %s1980_s12 }
  0x40   : > { %p1504_p1 = scmp.ge.s32.totalorder %s225_s30, 2 }
  0x41   : > { %s230_s3 = ssub.s32 (!%p1504_p1), 1, %s3141_s6  ;;  %s1405_s4 = smul.u32 (!%p1504_p1), 192, %s1980_s12 }
  0x42   : > { %229 = sbr.rel (%p1504_p1) target bundleno = 103 (0x67), region = 54  ;;  %s238_s26 = scalar_lea.sflag (!%p1504_p1), [#allocation3], %s230_s3 }
  0x43   : > { %s1406_s5 = smul.u32 (!%p1504_p1), 432, %s1984_s13 }
  0x44   : > { %s236_s8 = smul.u32 (!%p1504_p1), 240, %s230_s3 }
  0x45   : > { %s1407_s17 = sadd.s32 (!%p1504_p1), %s1406_s5, %s1405_s4 }
  0x46   : > { %s2177_s24 = scalar_lea.vmem (!%p1504_p1), %s3120_s0, %s1407_s17  ;;  %s2182_s25 = scalar_lea.vmem (!%p1504_p1), [#allocation2], %s236_s8 }
  0x47   : > { %v1505_v30 = vld [vmem:[%s2177_s24 + $0xc0] sm:$0xff]  ;;  %v1506_v31 = vld [vmem:[%s2177_s24 + $0xc8] sm:$0xff]  ;;  %v1507_v32 = vld [vmem:[%s2177_s24 + $0xd8] sm:$0xff] }
  0x48   : > { %252 = vst [vmem:[%s2182_s25] sm:$0xff] %v1505_v30  ;;  %v1508_v33 = vld [vmem:[%s2177_s24 + $0xe0] sm:$0xff]  ;;  %v1509_v34 = vld [vmem:[%s2177_s24 + $0xf0] sm:$0xff]  ;;  %v1510_v35 = vld [vmem:[%s2177_s24 + $0xf8] sm:$0xff] }
  0x49   : > { %254 = vst [vmem:[%s2182_s25 + $0x8] sm:$0xff] %v1506_v31  ;;  %v1511_v36 = vld [vmem:[%s2177_s24 + $0x108] sm:$0xff]  ;;  %v1512_v37 = vld [vmem:[%s2177_s24 + $0x110] sm:$0xff]  ;;  %v1513_v38 = vld [vmem:[%s2177_s24 + $0x120] sm:$0xff] }
  0x4a   : > { %256 = vst [vmem:[%s2182_s25 + $0x18] sm:$0xff] %v1507_v32  ;;  %v1514_v39 = vld [vmem:[%s2177_s24 + $0x128] sm:$0xff]  ;;  %v1515_v40 = vld [vmem:[%s2177_s24 + $0x138] sm:$0xff]  ;;  %v1516_v41 = vld [vmem:[%s2177_s24 + $0x140] sm:$0xff] }
  0x4b   : > { %258 = vst [vmem:[%s2182_s25 + $0x20] sm:$0xff] %v1508_v33  ;;  %v1517_v42 = vld [vmem:[%s2177_s24 + $0x150] sm:$0xff]  ;;  %v1518_v43 = vld [vmem:[%s2177_s24 + $0x158] sm:$0xff]  ;;  %v1519_v44 = vld [vmem:[%s2177_s24 + $0x168] sm:$0xff] }
  0x4c   : > { %260 = vst [vmem:[%s2182_s25 + $0x30] sm:$0xff] %v1509_v34  ;;  %v1520_v45 = vld [vmem:[%s2177_s24 + $0x170] sm:$0xff]  ;;  %v1521_v46 = vld [vmem:[%s2177_s24 + $0x180] sm:$0xff]  ;;  %v1522_v47 = vld [vmem:[%s2177_s24 + $0x188] sm:$0xff] }
  0x4d   : > { %262 = vst [vmem:[%s2182_s25 + $0x38] sm:$0xff] %v1510_v35  ;;  %v1523_v48 = vld [vmem:[%s2177_s24 + $0x198] sm:$0xff]  ;;  %v1524_v49 = vld [vmem:[%s2177_s24 + $0x1a0] sm:$0xff]  ;;  %v1525_v50 = vld [vmem:[%s2177_s24 + $0xd0] sm:$0x3] }
  0x4e   : > { %264 = vst [vmem:[%s2182_s25 + $0x48] sm:$0xff] %v1511_v36  ;;  %v1527_v51 = vld [vmem:[%s2177_s24 + $0xe8] sm:$0x3]  ;;  %v1529_v52 = vld [vmem:[%s2177_s24 + $0x100] sm:$0x3] }
  0x4f   : > { %266 = vst [vmem:[%s2182_s25 + $0x50] sm:$0xff] %v1512_v37  ;;  %v1531_v53 = vld [vmem:[%s2177_s24 + $0x118] sm:$0x3]  ;;  %v1533_v54 = vld [vmem:[%s2177_s24 + $0x130] sm:$0x3] }
  0x50   : > { %268 = vst [vmem:[%s2182_s25 + $0x60] sm:$0xff] %v1513_v38  ;;  %v1535_v55 = vld [vmem:[%s2177_s24 + $0x148] sm:$0x3]  ;;  %v1537_v56 = vld [vmem:[%s2177_s24 + $0x160] sm:$0x3] }
  0x51   : > { %270 = vst [vmem:[%s2182_s25 + $0x68] sm:$0xff] %v1514_v39  ;;  %v1539_v57 = vld [vmem:[%s2177_s24 + $0x178] sm:$0x3]  ;;  %v1541_v58 = vld [vmem:[%s2177_s24 + $0x190] sm:$0x3] }
  0x52   : > { %272 = vst [vmem:[%s2182_s25 + $0x78] sm:$0xff] %v1515_v40  ;;  %v1543_v59 = vld [vmem:[%s2177_s24 + $0x1a8] sm:$0x3] }
  0x53   : > { %274 = vst [vmem:[%s2182_s25 + $0x80] sm:$0xff] %v1516_v41 }
  0x54   : > { %276 = vst [vmem:[%s2182_s25 + $0x90] sm:$0xff] %v1517_v42 }
  0x55   : > { %278 = vst [vmem:[%s2182_s25 + $0x98] sm:$0xff] %v1518_v43 }
  0x56   : > { %280 = vst [vmem:[%s2182_s25 + $0xa8] sm:$0xff] %v1519_v44 }
  0x57   : > { %282 = vst [vmem:[%s2182_s25 + $0xb0] sm:$0xff] %v1520_v45 }
  0x58   : > { %284 = vst [vmem:[%s2182_s25 + $0xc0] sm:$0xff] %v1521_v46 }
  0x59   : > { %286 = vst [vmem:[%s2182_s25 + $0xc8] sm:$0xff] %v1522_v47 }
  0x5a   : > { %288 = vst [vmem:[%s2182_s25 + $0xd8] sm:$0xff] %v1523_v48 }
  0x5b   : > { %290 = vst [vmem:[%s2182_s25 + $0xe0] sm:$0xff] %v1524_v49 }
  0x5c   : > { %1526 = vst [vmem:[%s2182_s25 + $0x10] sm:$0x3] %v1525_v50 }
  0x5d   : > { %1528 = vst [vmem:[%s2182_s25 + $0x28] sm:$0x3] %v1527_v51 }
  0x5e   : > { %1530 = vst [vmem:[%s2182_s25 + $0x40] sm:$0x3] %v1529_v52 }
  0x5f   : > { %1532 = vst [vmem:[%s2182_s25 + $0x58] sm:$0x3] %v1531_v53 }
  0x60   : > { %1534 = vst [vmem:[%s2182_s25 + $0x70] sm:$0x3] %v1533_v54 }
  0x61   : > { %1536 = vst [vmem:[%s2182_s25 + $0x88] sm:$0x3] %v1535_v55 }
  0x62   : > { %1538 = vst [vmem:[%s2182_s25 + $0xa0] sm:$0x3] %v1537_v56 }
  0x63   : > { %1540 = vst [vmem:[%s2182_s25 + $0xb8] sm:$0x3] %v1539_v57 }
  0x64   : > { %1542 = vst [vmem:[%s2182_s25 + $0xd0] sm:$0x3] %v1541_v58 }
  0x65   : > { %1544 = vst [vmem:[%s2182_s25 + $0xe8] sm:$0x3] %v1543_v59 }
  0x66   : > { %324 = vsyncadd %s238_s26, 2880 }
  0x67 PF: > { %v1560_v60 = vld [vmem:[%s3121_s1 + $0xf8] sm:$0xff]  ;;  %v1559_v61 = vld [vmem:[%s3121_s1 + $0xf0] sm:$0xff]  ;;  %v1558_v62 = vld [vmem:[%s3121_s1 + $0xe8] sm:$0xff]  ;;  %s325_s4 = smul.u32 240, %s3141_s6  ;;  %s1772_s30 = sshll.u32 %s1984_s13, 5 }
  0x68   : > { %1779 = vmatpush.msra.mxu1 %v1560_v60  ;;  %1780 = vmatpush.msra.mxu2 %v1560_v60  ;;  %v1557_v63 = vld [vmem:[%s3121_s1 + $0xe0] sm:$0xff]  ;;  %v1556_v0 = vld [vmem:[%s3121_s1 + $0xd8] sm:$0xff]  ;;  %v1555_v1 = vld [vmem:[%s3121_s1 + $0xd0] sm:$0xff]  ;;  %s1356_s17 = sshll.u32 %s2094_s7, 4  ;;  %s1341_s6 = scalar_lea.sflag [#allocation5], %s107_s28  ;;  %s1357_s17 = int_to_ptr.vmem [resolvable:$true] %s1356_s17 }
  0x69   : > { %1781 = vmatpush.msra.mxu3 %v1560_v60  ;;  %392 = vmatpush.msra.mxu0 %v1560_v60  ;;  %v1554_v2 = vld [vmem:[%s3121_s1 + $0xc8] sm:$0xff]  ;;  %v1553_v3 = vld [vmem:[%s3121_s1 + $0xc0] sm:$0xff]  ;;  %v1552_v4 = vld [vmem:[%s3121_s1 + $0xb8] sm:$0xff]  ;;  %s2292_s21 = scalar_lea.vmem [#allocation2], %s325_s4  ;;  %s1920_s29 = scalar_lea.hbm %s3122_s2, 512 }
  0x6a   : > { %1782 = vmatpush.msra.mxu1 %v1559_v61  ;;  %1783 = vmatpush.msra.mxu2 %v1559_v61  ;;  %v1551_v5 = vld [vmem:[%s3121_s1 + $0xb0] sm:$0xff]  ;;  %v1550_v6 = vld [vmem:[%s3121_s1 + $0xa8] sm:$0xff]  ;;  %v1549_v7 = vld [vmem:[%s3121_s1 + $0xa0] sm:$0xff] }
  0x6b   : > { %1784 = vmatpush.msra.mxu3 %v1559_v61  ;;  %393 = vmatpush.msra.mxu0 %v1559_v61  ;;  %v1548_v8 = vld [vmem:[%s3121_s1 + $0x98] sm:$0xff]  ;;  %v1547_v9 = vld [vmem:[%s3121_s1 + $0x90] sm:$0xff]  ;;  %v1546_v10 = vld [vmem:[%s3121_s1 + $0x88] sm:$0xff] }
  0x6c   : > { %1785 = vmatpush.msra.mxu1 %v1558_v62  ;;  %1786 = vmatpush.msra.mxu2 %v1558_v62  ;;  %v1545_v11 = vld [vmem:[%s3121_s1 + $0x80] sm:$0xff]  ;;  %v1576_v14 = vld [vmem:[%s3121_s1 + $0x178] sm:$0xff]  ;;  %v1575_v17 = vld [vmem:[%s3121_s1 + $0x170] sm:$0xff] }
  0x6d   : > { %1787 = vmatpush.msra.mxu3 %v1558_v62  ;;  %394 = vmatpush.msra.mxu0 %v1558_v62  ;;  %v2295_v12 = vld [vmem:[%s2292_s21 + $0x31] sm:$0xff]  ;;  %v2298_v13 = vld [vmem:[%s2292_s21 + $0x61] sm:$0xff]  ;;  %v2341_v27 = vld [vmem:[%s2292_s21 + $0x69] sm:$0xff] }
  0x6e   : > { %1788 = vmatpush.msra.mxu1 %v1557_v63  ;;  %1789 = vmatpush.msra.mxu2 %v1557_v63  ;;  %v358_v15 = vld [vmem:[%s3121_s1 + $0x78] sm:$0xff]  ;;  %v357_v19 = vld [vmem:[%s3121_s1 + $0x70] sm:$0xff]  ;;  %v1574_v20 = vld [vmem:[%s3121_s1 + $0x168] sm:$0xff] }
  0x6f   : > { %1790 = vmatpush.msra.mxu3 %v1557_v63  ;;  %395 = vmatpush.msra.mxu0 %v1557_v63  ;;  %v2307_v16 = vld [vmem:[%s2292_s21 + $0x91] sm:$0xff]  ;;  %v359_v23 = vld [vmem:[%s2292_s21 + $0x1] sm:$0xff]  ;;  %v2344_v28 = vld [vmem:[%s2292_s21 + $0x39] sm:$0xff] }
  0x70   : > { %1791 = vmatpush.msra.mxu1 %v1556_v0  ;;  %1792 = vmatpush.msra.mxu2 %v1556_v0  ;;  %v1608_v18 = vld [vmem:[%s3121_s1 + $0x1f8] sm:$0xff]  ;;  %v1607_v21 = vld [vmem:[%s3121_s1 + $0x1f0] sm:$0xff]  ;;  %v356_v22 = vld [vmem:[%s3121_s1 + $0x68] sm:$0xff] }
  0x71   : > { %1793 = vmatpush.msra.mxu3 %v1556_v0  ;;  %396 = vmatpush.msra.mxu0 %v1556_v0  ;;  %v1573_v24 = vld [vmem:[%s3121_s1 + $0x160] sm:$0xff]  ;;  %v1606_v25 = vld [vmem:[%s3121_s1 + $0x1e8] sm:$0xff]  ;;  %v1572_v29 = vld [vmem:[%s3121_s1 + $0x158] sm:$0xff] }
  0x72   : > { %1794 = vmatpush.msra.mxu1 %v1555_v1  ;;  %1795 = vmatpush.msra.mxu2 %v1555_v1  ;;  %v355_v26 = vld [vmem:[%s3121_s1 + $0x60] sm:$0xff]  ;;  %v354_v31 = vld [vmem:[%s3121_s1 + $0x58] sm:$0xff]  ;;  %v1571_v33 = vld [vmem:[%s3121_s1 + $0x150] sm:$0xff] }
  0x73   : > { %1796 = vmatpush.msra.mxu3 %v1555_v1  ;;  %397 = vmatpush.msra.mxu0 %v1555_v1  ;;  %v1605_v30 = vld [vmem:[%s3121_s1 + $0x1e0] sm:$0xff]  ;;  %v1604_v34 = vld [vmem:[%s3121_s1 + $0x1d8] sm:$0xff]  ;;  %v353_v36 = vld [vmem:[%s3121_s1 + $0x50] sm:$0xff] }
  0x74   : > { %1797 = vmatpush.msra.mxu1 %v1554_v2  ;;  %1798 = vmatpush.msra.mxu2 %v1554_v2  ;;  %v2357_v32 = vld [vmem:[%s2292_s21 + $0x99] sm:$0xff]  ;;  %v2401_v46 = vld [vmem:[%s2292_s21 + $0x49] sm:$0xff]  ;;  %v2459_v1 = vld [vmem:[%s2292_s21 + $0x81] sm:$0xff] }
  0x75   : > { %1799 = vmatpush.msra.mxu3 %v1554_v2  ;;  %398 = vmatpush.msra.mxu0 %v1554_v2  ;;  %v1640_v35 = vld [vmem:[%s3121_s1 + $0x278] sm:$0xff]  ;;  %v1570_v37 = vld [vmem:[%s3121_s1 + $0x148] sm:$0xff]  ;;  %v1603_v38 = vld [vmem:[%s3121_s1 + $0x1d0] sm:$0xff] }
  0x76   : > { %1800 = vmatpush.msra.mxu1 %v1553_v3  ;;  %1801 = vmatpush.msra.mxu2 %v1553_v3  ;;  %v1639_v39 = vld [vmem:[%s3121_s1 + $0x270] sm:$0xff]  ;;  %v352_v40 = vld [vmem:[%s3121_s1 + $0x48] sm:$0xff]  ;;  %v1569_v41 = vld [vmem:[%s3121_s1 + $0x140] sm:$0xff] }
  0x77   : > { %1802 = vmatpush.msra.mxu3 %v1553_v3  ;;  %399 = vmatpush.msra.mxu0 %v1553_v3  ;;  %v1602_v42 = vld [vmem:[%s3121_s1 + $0x1c8] sm:$0xff]  ;;  %v351_v44 = vld [vmem:[%s3121_s1 + $0x40] sm:$0xff]  ;;  %v1568_v47 = vld [vmem:[%s3121_s1 + $0x138] sm:$0xff] }
  0x78   : > { %1803 = vmatpush.msra.mxu1 %v1552_v4  ;;  %1804 = vmatpush.msra.mxu2 %v1552_v4  ;;  %v1638_v43 = vld [vmem:[%s3121_s1 + $0x268] sm:$0xff]  ;;  %v1601_v48 = vld [vmem:[%s3121_s1 + $0x1c0] sm:$0xff]  ;;  %v350_v50 = vld [vmem:[%s3121_s1 + $0x38] sm:$0xff] }
  0x79   : > { %1805 = vmatpush.msra.mxu3 %v1552_v4  ;;  %400 = vmatpush.msra.mxu0 %v1552_v4  ;;  %v2398_v45 = vld [vmem:[%s2292_s21 + $0x79] sm:$0xff]  ;;  %v360_v51 = vld [vmem:[%s2292_s21 + $0x9] sm:$0xff]  ;;  %v2462_v2 = vld [vmem:[%s2292_s21 + $0x51] sm:$0xff] }
  0x7a   : > { %1806 = vmatpush.msra.mxu1 %v1551_v5  ;;  %1807 = vmatpush.msra.mxu2 %v1551_v5  ;;  %v1637_v49 = vld [vmem:[%s3121_s1 + $0x260] sm:$0xff]  ;;  %v1567_v53 = vld [vmem:[%s3121_s1 + $0x130] sm:$0xff]  ;;  %v1600_v54 = vld [vmem:[%s3121_s1 + $0x1b8] sm:$0xff] }
  0x7b   : > { %1808 = vmatpush.msra.mxu3 %v1551_v5  ;;  %401 = vmatpush.msra.mxu0 %v1551_v5  ;;  %v2419_v52 = vld [vmem:[%s2292_s21 + $0xa9] sm:$0xff] }
  0x7c   : > { %1809 = vmatpush.msra.mxu1 %v1550_v6  ;;  %1810 = vmatpush.msra.mxu2 %v1550_v6  ;;  %v1636_v55 = vld [vmem:[%s3121_s1 + $0x258] sm:$0xff]  ;;  %v349_v56 = vld [vmem:[%s3121_s1 + $0x30] sm:$0xff]  ;;  %v1566_v57 = vld [vmem:[%s3121_s1 + $0x128] sm:$0xff] }
  0x7d   : > { %1811 = vmatpush.msra.mxu3 %v1550_v6  ;;  %402 = vmatpush.msra.mxu0 %v1550_v6  ;;  %v1599_v58 = vld [vmem:[%s3121_s1 + $0x1b0] sm:$0xff]  ;;  %v348_v60 = vld [vmem:[%s3121_s1 + $0x28] sm:$0xff]  ;;  %v1565_v61 = vld [vmem:[%s3121_s1 + $0x120] sm:$0xff] }
  0x7e   : > { %1812 = vmatpush.msra.mxu1 %v1549_v7  ;;  %1813 = vmatpush.msra.mxu2 %v1549_v7  ;;  %v1635_v59 = vld [vmem:[%s3121_s1 + $0x250] sm:$0xff]  ;;  %v1598_v62 = vld [vmem:[%s3121_s1 + $0x1a8] sm:$0xff]  ;;  %v347_v0 = vld [vmem:[%s3121_s1 + $0x20] sm:$0xff] }
  0x7f   : > { %1814 = vmatpush.msra.mxu3 %v1549_v7  ;;  %403 = vmatpush.msra.mxu0 %v1549_v7  ;;  %v1634_v63 = vld [vmem:[%s3121_s1 + $0x248] sm:$0xff]  ;;  %v1564_v3 = vld [vmem:[%s3121_s1 + $0x118] sm:$0xff]  ;;  %v1597_v4 = vld [vmem:[%s3121_s1 + $0x1a0] sm:$0xff] }
  0x80   : > { %1815 = vmatpush.msra.mxu1 %v1548_v8  ;;  %1816 = vmatpush.msra.mxu2 %v1548_v8  ;;  %v1633_v5 = vld [vmem:[%s3121_s1 + $0x240] sm:$0xff]  ;;  %v346_v6 = vld [vmem:[%s3121_s1 + $0x18] sm:$0xff] }
  0x81   : > { %1817 = vmatpush.msra.mxu3 %v1548_v8  ;;  %404 = vmatpush.msra.mxu0 %v1548_v8  ;;  %v2478_v7 = vld [vmem:[%s2292_s21 + $0x19] sm:$0xff]  ;;  %v2482_v8 = vld [vmem:[%s2292_s21 + $0xb1] sm:$0xff] }
  0x82   : > { %1818 = vmatpush.msra.mxu1 %v1547_v9  ;;  %1819 = vmatpush.msra.mxu2 %v1547_v9 }
  0x83   : > { %1820 = vmatpush.msra.mxu3 %v1547_v9  ;;  %405 = vmatpush.msra.mxu0 %v1547_v9  ;;  %v1563_v9 = vld [vmem:[%s3121_s1 + $0x110] sm:$0xff] }
  0x84   : > { %1821 = vmatpush.msra.mxu1 %v1546_v10  ;;  %1822 = vmatpush.msra.mxu2 %v1546_v10 }
  0x85   : > { %1823 = vmatpush.msra.mxu3 %v1546_v10  ;;  %406 = vmatpush.msra.mxu0 %v1546_v10  ;;  %v1596_v10 = vld [vmem:[%s3121_s1 + $0x198] sm:$0xff] }
  0x86   : > { %1824 = vmatpush.msra.mxu1 %v1545_v11  ;;  %1825 = vmatpush.msra.mxu2 %v1545_v11 }
  0x87   : > { %420 = vmatmul.f32.vlgmr.msra.gmra.mxu1 %v2295_v12  ;;  %432 = vmatmul.f32.vlgmr.msra.gmra.mxu2 %v2298_v13 }
  0x88   : > { %555 = vmatpush.msrb.mxu2 %v1576_v14  ;;  %1826 = vmatpush.msra.mxu3 %v1545_v11  ;;  %v345_v14 = vld [vmem:[%s3121_s1 + $0x10] sm:$0xff] }
  0x89   : > { %457 = vmatpush.msrb.mxu1 %v358_v15  ;;  %444 = vmatmul.f32.vlgmr.msra.gmra.mxu3 %v2307_v16  ;;  %v1562_v15 = vld [vmem:[%s3121_s1 + $0x108] sm:$0xff] }
  0x8a   : > { %556 = vmatpush.msrb.mxu2 %v1575_v17  ;;  %671 = vmatpush.msrb.mxu3 %v1608_v18  ;;  %v1595_v17 = vld [vmem:[%s3121_s1 + $0x190] sm:$0xff] }
  0x8b   : > { %458 = vmatpush.msrb.mxu1 %v357_v19  ;;  %407 = vmatpush.msra.mxu0 %v1545_v11  ;;  %v1632_v11 = vld [vmem:[%s3121_s1 + $0x238] sm:$0xff]  ;;  %v1631_v18 = vld [vmem:[%s3121_s1 + $0x230] sm:$0xff]  ;;  %v344_v19 = vld [vmem:[%s3121_s1 + $0x8] sm:$0xff] }
  0x8c   : > { %557 = vmatpush.msrb.mxu2 %v1574_v20  ;;  %672 = vmatpush.msrb.mxu3 %v1607_v21  ;;  %v1561_v20 = vld [vmem:[%s3121_s1 + $0x100] sm:$0xff]  ;;  %v1594_v21 = vld [vmem:[%s3121_s1 + $0x188] sm:$0xff] }
  0x8d   : > { %459 = vmatpush.msrb.mxu1 %v356_v22  ;;  %408 = vmatmul.f32.vlgmr.msra.gmra.mxu0 %v359_v23  ;;  %v1630_v22 = vld [vmem:[%s3121_s1 + $0x228] sm:$0xff]  ;;  %v343_v23 = vld [vmem:[%s3121_s1] sm:$0xff] }
  0x8e   : > { %558 = vmatpush.msrb.mxu2 %v1573_v24  ;;  %673 = vmatpush.msrb.mxu3 %v1606_v25  ;;  %v522_v24 = vld [vmem:[%s2292_s21 + $0x2] sm:$0xff] }
  0x8f   : > { %460 = vmatpush.msrb.mxu1 %v355_v26  ;;  %435 = vmatmul.f32.gmra.mxu2 %v2341_v27  ;;  %v327_v25 = vld [vmem:[%s2292_s21] sm:$0xff] }
  0x90   : > { %423 = vmatmul.f32.gmra.mxu1 %v2344_v28  ;;  %559 = vmatpush.msrb.mxu2 %v1572_v29  ;;  %v1593_v26 = vld [vmem:[%s3121_s1 + $0x180] sm:$0xff] }
  0x91   : > { %674 = vmatpush.msrb.mxu3 %v1605_v30  ;;  %461 = vmatpush.msrb.mxu1 %v354_v31  ;;  %v1629_v29 = vld [vmem:[%s3121_s1 + $0x220] sm:$0xff]  ;;  %v1704_v30 = vld [vmem:[%s3121_s1 + $0x378] sm:$0xff] }
  0x92   : > { %447 = vmatmul.f32.gmra.mxu3 %v2357_v32  ;;  %560 = vmatpush.msrb.mxu2 %v1571_v33  ;;  %v2534_v31 = vld [vmem:[%s2292_s21 + $0x21] sm:$0xff]  ;;  %v1577_v33 = vld [vmem:[%s2292_s21 + $0x18] sm:$0xff] }
  0x93   : > { %675 = vmatpush.msrb.mxu3 %v1604_v34  ;;  %785 = vmatpush.msrb.mxu0 %v1640_v35  ;;  %v1628_v34 = vld [vmem:[%s3121_s1 + $0x218] sm:$0xff] }
  0x94   : > { %462 = vmatpush.msrb.mxu1 %v353_v36  ;;  %561 = vmatpush.msrb.mxu2 %v1570_v37  ;;  %v1736_v35 = vld [vmem:[%s3121_s1 + $0x3f8] sm:$0xff]  ;;  %v1703_v37 = vld [vmem:[%s3121_s1 + $0x370] sm:$0xff] }
  0x95   : > { %676 = vmatpush.msrb.mxu3 %v1603_v38  ;;  %786 = vmatpush.msrb.mxu0 %v1639_v39  ;;  %v1672_v36 = vld [vmem:[%s3121_s1 + $0x2f8] sm:$0xff]  ;;  %v1627_v38 = vld [vmem:[%s3121_s1 + $0x210] sm:$0xff] }
  0x96   : > { %463 = vmatpush.msrb.mxu1 %v352_v40  ;;  %562 = vmatpush.msrb.mxu2 %v1569_v41  ;;  %v1735_v39 = vld [vmem:[%s3121_s1 + $0x3f0] sm:$0xff]  ;;  %v1702_v41 = vld [vmem:[%s3121_s1 + $0x368] sm:$0xff] }
  0x97   : > { %677 = vmatpush.msrb.mxu3 %v1602_v42  ;;  %787 = vmatpush.msrb.mxu0 %v1638_v43  ;;  %v1671_v40 = vld [vmem:[%s3121_s1 + $0x2f0] sm:$0xff]  ;;  %v1626_v42 = vld [vmem:[%s3121_s1 + $0x208] sm:$0xff] }
  0x98   : > { %464 = vmatpush.msrb.mxu1 %v351_v44  ;;  %438 = vmatmul.f32.gmra.mxu2 %v2398_v45  ;;  %v523_v43 = vld [vmem:[%s2292_s21 + $0xa] sm:$0xff] }
  0x99   : > { %426 = vmatmul.f32.gmra.mxu1 %v2401_v46  ;;  %563 = vmatpush.msrb.mxu2 %v1568_v47  ;;  %v328_v44 = vld [vmem:[%s2292_s21 + $0x8] sm:$0xff] }
  0x9a   : > { %678 = vmatpush.msrb.mxu3 %v1601_v48  ;;  %788 = vmatpush.msrb.mxu0 %v1637_v49  ;;  %v1734_v47 = vld [vmem:[%s3121_s1 + $0x3e8] sm:$0xff]  ;;  %v1625_v48 = vld [vmem:[%s3121_s1 + $0x200] sm:$0xff] }
  0x9b   : > { %465 = vmatpush.msrb.mxu1 %v350_v50  ;;  %411 = vmatmul.f32.gmra.mxu0 %v360_v51  ;;  %v1670_v49 = vld [vmem:[%s3121_s1 + $0x2e8] sm:$0xff]  ;;  %v1578_v50 = vld [vmem:[%s2292_s21 + $0x20] sm:$0xff]  ;;  %v1768_v51 = vld [vmem:[%s3121_s1 + $0x478] sm:$0xff] }
  0x9c   : > { %450 = vmatmul.f32.gmra.mxu3 %v2419_v52  ;;  %564 = vmatpush.msrb.mxu2 %v1567_v53  ;;  %v1701_v53 = vld [vmem:[%s3121_s1 + $0x360] sm:$0xff] }
  0x9d   : > { %679 = vmatpush.msrb.mxu3 %v1600_v54  ;;  %789 = vmatpush.msrb.mxu0 %v1636_v55  ;;  %v1733_v54 = vld [vmem:[%s3121_s1 + $0x3e0] sm:$0xff] }
  0x9e   : > { %466 = vmatpush.msrb.mxu1 %v349_v56  ;;  %565 = vmatpush.msrb.mxu2 %v1566_v57  ;;  %v1669_v55 = vld [vmem:[%s3121_s1 + $0x2e0] sm:$0xff]  ;;  %v1767_v56 = vld [vmem:[%s3121_s1 + $0x470] sm:$0xff]  ;;  %v1700_v57 = vld [vmem:[%s3121_s1 + $0x358] sm:$0xff] }
  0x9f   : > { %680 = vmatpush.msrb.mxu3 %v1599_v58  ;;  %790 = vmatpush.msrb.mxu0 %v1635_v59  ;;  %v1732_v58 = vld [vmem:[%s3121_s1 + $0x3d8] sm:$0xff] }
  0xa0   : > { %467 = vmatpush.msrb.mxu1 %v348_v60  ;;  %566 = vmatpush.msrb.mxu2 %v1565_v61  ;;  %v1668_v59 = vld [vmem:[%s3121_s1 + $0x2d8] sm:$0xff]  ;;  %v1766_v61 = vld [vmem:[%s3121_s1 + $0x468] sm:$0xff] }
  0xa1   : > { %681 = vmatpush.msrb.mxu3 %v1598_v62  ;;  %791 = vmatpush.msrb.mxu0 %v1634_v63  ;;  %v2603_v60 = vld [vmem:[%s2292_s21 + $0x1a] sm:$0xff] }
  0xa2   : > { %468 = vmatpush.msrb.mxu1 %v347_v0  ;;  %441 = vmatmul.f32.gmra.mxu2 %v2459_v1  ;;  %v1699_v62 = vld [vmem:[%s3121_s1 + $0x350] sm:$0xff]  ;;  %v1765_v63 = vld [vmem:[%s3121_s1 + $0x460] sm:$0xff] }
  0xa3   : > { %429 = vmatmul.f32.gmra.mxu1 %v2462_v2  ;;  %567 = vmatpush.msrb.mxu2 %v1564_v3  ;;  %v1731_v0 = vld [vmem:[%s3121_s1 + $0x3d0] sm:$0xff] }
  0xa4   : > { %682 = vmatpush.msrb.mxu3 %v1597_v4  ;;  %792 = vmatpush.msrb.mxu0 %v1633_v5  ;;  %v2619_v3 = vld [vmem:[%s2292_s21 + $0x30] sm:$0xff]  ;;  %v1764_v4 = vld [vmem:[%s3121_s1 + $0x458] sm:$0xff] }
  0xa5   : > { %469 = vmatpush.msrb.mxu1 %v346_v6  ;;  %414 = vmatmul.f32.gmra.mxu0 %v2478_v7  ;;  %v1667_v5 = vld [vmem:[%s3121_s1 + $0x2d0] sm:$0xff]  ;;  %v1698_v6 = vld [vmem:[%s3121_s1 + $0x348] sm:$0xff] }
  0xa6   : > { %453 = vmatmul.f32.gmra.mxu3 %v2482_v8  ;;  %568 = vmatpush.msrb.mxu2 %v1563_v9  ;;  %v1763_v9 = vld [vmem:[%s3121_s1 + $0x450] sm:$0xff] }
  0xa7   : > { %683 = vmatpush.msrb.mxu3 %v1596_v10  ;;  %793 = vmatpush.msrb.mxu0 %v1632_v11  ;;  %v1666_v10 = vld [vmem:[%s3121_s1 + $0x2c8] sm:$0xff] }
  0xa8   : > { %470 = vmatpush.msrb.mxu1 %v345_v14  ;;  %569 = vmatpush.msrb.mxu2 %v1562_v15  ;;  %v2642_v11 = vld [vmem:[%s2292_s21 + $0x22] sm:$0xff]  ;;  %v2646_v14 = vld [vmem:[%s2292_s21 + $0x38] sm:$0xff] }
  0xa9   : > { %684 = vmatpush.msrb.mxu3 %v1595_v17  ;;  %794 = vmatpush.msrb.mxu0 %v1631_v18  ;;  %v1697_v15 = vld [vmem:[%s3121_s1 + $0x340] sm:$0xff]  ;;  %v1762_v18 = vld [vmem:[%s3121_s1 + $0x448] sm:$0xff] }
  0xaa   : > { %471 = vmatpush.msrb.mxu1 %v344_v19  ;;  %570 = vmatpush.msrb.mxu2 %v1561_v20  ;;  %v1729_v17 = vld [vmem:[%s3121_s1 + $0x3c0] sm:$0xff] }
  0xab   : > { %685 = vmatpush.msrb.mxu3 %v1594_v21  ;;  %795 = vmatpush.msrb.mxu0 %v1630_v22  ;;  %v1665_v19 = vld [vmem:[%s3121_s1 + $0x2c0] sm:$0xff]  ;;  %v2667_v21 = vld [vmem:[%s2292_s21 + $0x48] sm:$0xff] }
  0xac   : > { %472 = vmatpush.msrb.mxu1 %v343_v23  ;;  %571 = vmatmul.f32.vlgmr.msrb.gmra.mxu2 %v522_v24  ;;  %v2663_v20 = vld [vmem:[%s2292_s21 + $0x32] sm:$0xff] }
  0xad   : > { %473 = vmatmul.f32.vlgmr.msrb.gmra.mxu1 %v327_v25  ;;  %686 = vmatpush.msrb.mxu3 %v1593_v26  ;;  %v1696_v22 = vld [vmem:[%s3121_s1 + $0x338] sm:$0xff]  ;;  %v1761_v24 = vld [vmem:[%s3121_s1 + $0x440] sm:$0xff] }
  0xae   : > { %796 = vmatpush.msrb.mxu0 %v1629_v29  ;;  %1015 = vmatpush.msra.mxu2 %v1704_v30  ;;  %v1728_v23 = vld [vmem:[%s3121_s1 + $0x3b8] sm:$0xff]  ;;  %v2689_v29 = vld [vmem:[%s2292_s21 + $0x50] sm:$0xff] }
  0xaf   : > { %417 = vmatmul.f32.gmra.mxu0 %v2534_v31  ;;  %687 = vmatmul.f32.vlgmr.msrb.gmra.mxu3 %v1577_v33  ;;  %v1664_v25 = vld [vmem:[%s3121_s1 + $0x2b8] sm:$0xff]  ;;  %v1695_v30 = vld [vmem:[%s3121_s1 + $0x330] sm:$0xff] }
  0xb0   : > { %797 = vmatpush.msrb.mxu0 %v1628_v34  ;;  %1129 = vmatpush.msra.mxu3 %v1736_v35  ;;  %v2685_v26 = vld [vmem:[%s2292_s21 + $0x3a] sm:$0xff]  ;;  %v2707_v35 = vld [vmem:[%s2292_s21 + $0x4a] sm:$0xff] }
  0xb1   : > { %899 = vmatpush.msra.mxu1 %v1672_v36  ;;  %1016 = vmatpush.msra.mxu2 %v1703_v37  ;;  %v1663_v34 = vld [vmem:[%s3121_s1 + $0x2b0] sm:$0xff]  ;;  %v1694_v37 = vld [vmem:[%s3121_s1 + $0x328] sm:$0xff] }
  0xb2   : > { %798 = vmatpush.msrb.mxu0 %v1627_v38  ;;  %1130 = vmatpush.msra.mxu3 %v1735_v39  ;;  %v2711_v36 = vld [vmem:[%s2292_s21 + $0x60] sm:$0xff]  ;;  %v1726_v38 = vld [vmem:[%s3121_s1 + $0x3a8] sm:$0xff] }
  0xb3   : > { %900 = vmatpush.msra.mxu1 %v1671_v40  ;;  %1017 = vmatpush.msra.mxu2 %v1702_v41  ;;  %v1759_v39 = vld [vmem:[%s3121_s1 + $0x430] sm:$0xff]  ;;  %v1662_v40 = vld [vmem:[%s3121_s1 + $0x2a8] sm:$0xff] }
  0xb4   : > { %799 = vmatpush.msrb.mxu0 %v1626_v42  ;;  %574 = vmatmul.f32.gmra.mxu2 %v523_v43  ;;  %v2729_v41 = vld [vmem:[%s2292_s21 + $0x52] sm:$0xff]  ;;  %v2733_v42 = vld [vmem:[%s2292_s21 + $0x68] sm:$0xff] }
  0xb5   : > { %476 = vmatmul.f32.gmra.mxu1 %v328_v44  ;;  %1131 = vmatpush.msra.mxu3 %v1734_v47  ;;  %v1693_v43 = vld [vmem:[%s3121_s1 + $0x320] sm:$0xff]  ;;  %v1758_v47 = vld [vmem:[%s3121_s1 + $0x428] sm:$0xff] }
  0xb6   : > { %800 = vmatpush.msrb.mxu0 %v1625_v48  ;;  %901 = vmatpush.msra.mxu1 %v1670_v49  ;;  %v1725_v44 = vld [vmem:[%s3121_s1 + $0x3a0] sm:$0xff] }
  0xb7   : > { %690 = vmatmul.f32.gmra.mxu3 %v1578_v50  ;;  %801 = vmatmul.f32.vlgmr.msrb.gmra.mxu0 %v2478_v7  ;;  %v1730_v7 = vld [vmem:[%s3121_s1 + $0x3c8] sm:$0xff]  ;;  %v1661_v48 = vld [vmem:[%s3121_s1 + $0x2a0] sm:$0xff] }
  0xb8   : > { %1243 = vmatpush.msra.mxu0 %v1768_v51  ;;  %1018 = vmatpush.msra.mxu2 %v1701_v53  ;;  %v2751_v49 = vld [vmem:[%s2292_s21 + $0x62] sm:$0xff] }
  0xb9   : > { %1132 = vmatpush.msra.mxu3 %v1733_v54  ;;  %902 = vmatpush.msra.mxu1 %v1669_v55  ;;  %v1692_v51 = vld [vmem:[%s3121_s1 + $0x318] sm:$0xff]  ;;  %v1757_v54 = vld [vmem:[%s3121_s1 + $0x420] sm:$0xff] }
  0xba   : > { %1244 = vmatpush.msra.mxu0 %v1767_v56  ;;  %1019 = vmatpush.msra.mxu2 %v1700_v57  ;;  %v1724_v53 = vld [vmem:[%s3121_s1 + $0x398] sm:$0xff]  ;;  %v2777_v57 = vld [vmem:[%s2292_s21 + $0x80] sm:$0xff] }
  0xbb   : > { %1133 = vmatpush.msra.mxu3 %v1732_v58  ;;  %903 = vmatpush.msra.mxu1 %v1668_v59  ;;  %v1660_v55 = vld [vmem:[%s3121_s1 + $0x298] sm:$0xff]  ;;  %v1691_v58 = vld [vmem:[%s3121_s1 + $0x310] sm:$0xff] }
  0xbc   : > { %577 = vmatmul.f32.gmra.mxu2 %v2603_v60  ;;  %1245 = vmatpush.msra.mxu0 %v1766_v61  ;;  %v2773_v56 = vld [vmem:[%s2292_s21 + $0x6a] sm:$0xff] }
  0xbd   : > { %479 = vmatmul.f32.gmra.mxu1 %v1577_v33  ;;  %1020 = vmatpush.msra.mxu2 %v1699_v62  ;;  %v1760_v33 = vld [vmem:[%s3121_s1 + $0x438] sm:$0xff]  ;;  %v1723_v59 = vld [vmem:[%s3121_s1 + $0x390] sm:$0xff] }
  0xbe   : > { %1246 = vmatpush.msra.mxu0 %v1765_v63  ;;  %1134 = vmatpush.msra.mxu3 %v1731_v0  ;;  %v1756_v61 = vld [vmem:[%s3121_s1 + $0x418] sm:$0xff]  ;;  %v1659_v62 = vld [vmem:[%s3121_s1 + $0x290] sm:$0xff] }
  0xbf   : > { %693 = vmatmul.f32.gmra.mxu3 %v2619_v3  ;;  %804 = vmatmul.f32.gmra.mxu0 %v2534_v31  ;;  %v1727_v31 = vld [vmem:[%s3121_s1 + $0x3b0] sm:$0xff] }
  0xc0   : > { %1247 = vmatpush.msra.mxu0 %v1764_v4  ;;  %904 = vmatpush.msra.mxu1 %v1667_v5  ;;  %v2795_v63 = vld [vmem:[%s2292_s21 + $0x7a] sm:$0xff]  ;;  %v2799_v0 = vld [vmem:[%s2292_s21 + $0x90] sm:$0xff] }
  0xc1   : > { %1021 = vmatpush.msra.mxu2 %v1698_v6  ;;  %1135 = vmatpush.msra.mxu3 %v1730_v7  ;;  %v1690_v4 = vld [vmem:[%s3121_s1 + $0x308] sm:$0xff]  ;;  %v1755_v6 = vld [vmem:[%s3121_s1 + $0x410] sm:$0xff] }
  0xc2   : > { %1248 = vmatpush.msra.mxu0 %v1763_v9  ;;  %905 = vmatpush.msra.mxu1 %v1666_v10  ;;  %v1722_v5 = vld [vmem:[%s3121_s1 + $0x388] sm:$0xff] }
  0xc3   : > { %1022 = vmatpush.msra.mxu2 %v1697_v15  ;;  %1136 = vmatpush.msra.mxu3 %v1729_v17  ;;  %v1658_v7 = vld [vmem:[%s3121_s1 + $0x288] sm:$0xff]  ;;  %v1689_v17 = vld [vmem:[%s3121_s1 + $0x300] sm:$0xff] }
  0xc4   : > { %580 = vmatmul.f32.gmra.mxu2 %v2642_v11  ;;  %1249 = vmatpush.msra.mxu0 %v1762_v18  ;;  %v2817_v9 = vld [vmem:[%s2292_s21 + $0x82] sm:$0xff]  ;;  %v2821_v10 = vld [vmem:[%s2292_s21 + $0x98] sm:$0xff] }
  0xc5   : > { %482 = vmatmul.f32.gmra.mxu1 %v1578_v50  ;;  %1023 = vmatpush.msra.mxu2 %v1696_v22  ;;  %v2755_v50 = vld [vmem:[%s2292_s21 + $0x78] sm:$0xff]  ;;  %v1721_v18 = vld [vmem:[%s3121_s1 + $0x380] sm:$0xff] }
  0xc6   : > { %906 = vmatpush.msra.mxu1 %v1665_v19  ;;  %1137 = vmatpush.msra.mxu3 %v1728_v23  ;;  %v1754_v19 = vld [vmem:[%s3121_s1 + $0x408] sm:$0xff]  ;;  %v1657_v22 = vld [vmem:[%s3121_s1 + $0x280] sm:$0xff] }
  0xc7   : > { %696 = vmatmul.f32.gmra.mxu3 %v2646_v14  ;;  %807 = vmatmul.f32.gmra.mxu0 %v2295_v12  ;;  %v2841_v23 = vld [vmem:[%s2292_s21 + $0x92] sm:$0xff] }
  0xc8   : > { %1250 = vmatpush.msra.mxu0 %v1761_v24  ;;  %907 = vmatpush.msra.mxu1 %v1664_v25  ;;  %v2847_v24 = vld [vmem:[%s2292_s21 + $0xa8] sm:$0xff] }
  0xc9   : > { %1024 = vmatpush.msra.mxu2 %v1695_v30  ;;  %1138 = vmatpush.msra.mxu3 %v1727_v31 }
  0xca   : > { %1251 = vmatpush.msra.mxu0 %v1760_v33  ;;  %908 = vmatpush.msra.mxu1 %v1663_v34  ;;  %v1753_v33 = vld [vmem:[%s3121_s1 + $0x400] sm:$0xff] }
  0xcb   : > { %1025 = vmatpush.msra.mxu2 %v1694_v37  ;;  %1139 = vmatpush.msra.mxu3 %v1726_v38  ;;  %v2860_v34 = vld [vmem:[%s2292_s21 + $0x9a] sm:$0xff]  ;;  %v2866_v38 = vld [vmem:[%s2292_s21 + $0xb0] sm:$0xff] }
  0xcc   : > { %583 = vmatmul.f32.gmra.mxu2 %v2663_v20  ;;  %1252 = vmatpush.msra.mxu0 %v1759_v39 }
  0xcd   : > { %485 = vmatmul.f32.gmra.mxu1 %v2619_v3  ;;  %1026 = vmatpush.msra.mxu2 %v1693_v43  ;;  %v2876_v43 = vld [vmem:[%s2292_s21 + $0xaa] sm:$0xff] }
  0xce   : > { %909 = vmatpush.msra.mxu1 %v1662_v40  ;;  %1140 = vmatpush.msra.mxu3 %v1725_v44 }
  0xcf   : > { %699 = vmatmul.f32.gmra.mxu3 %v2667_v21  ;;  %810 = vmatmul.f32.gmra.mxu0 %v2344_v28 }
  0xd0   : > { %1253 = vmatpush.msra.mxu0 %v1758_v47  ;;  %910 = vmatpush.msra.mxu1 %v1661_v48  ;;  %v2882_v47 = vld [vmem:[%s2292_s21 + $0xc0] sm:$0xff] }
  0xd1   : > { %1027 = vmatpush.msra.mxu2 %v1692_v51  ;;  %1141 = vmatpush.msra.mxu3 %v1724_v53 }
  0xd2   : > { %1254 = vmatpush.msra.mxu0 %v1757_v54  ;;  %911 = vmatpush.msra.mxu1 %v1660_v55  ;;  %v2896_v54 = vld [vmem:[%s2292_s21 + $0xc8] sm:$0xff] }
  0xd3   : > { %1028 = vmatpush.msra.mxu2 %v1691_v58  ;;  %1142 = vmatpush.msra.mxu3 %v1723_v59  ;;  %v2899_v55 = vld [vmem:[%s2292_s21 + $0xc1] sm:$0xff] }
  0xd4   : > { %586 = vmatmul.f32.gmra.mxu2 %v2685_v26  ;;  %1255 = vmatpush.msra.mxu0 %v1756_v61 }
  0xd5   : > { %488 = vmatmul.f32.gmra.mxu1 %v2646_v14  ;;  %1029 = vmatpush.msra.mxu2 %v1690_v4  ;;  %v2910_v4 = vld [vmem:[%s2292_s21 + $0xc9] sm:$0xff] }
  0xd6   : > { %912 = vmatpush.msra.mxu1 %v1659_v62  ;;  %1143 = vmatpush.msra.mxu3 %v1722_v5 }
  0xd7   : > { %702 = vmatmul.f32.gmra.mxu3 %v2689_v29  ;;  %813 = vmatmul.f32.gmra.mxu0 %v2401_v46 }
  0xd8   : > { %1256 = vmatpush.msra.mxu0 %v1755_v6  ;;  %913 = vmatpush.msra.mxu1 %v1658_v7 }
  0xd9   : > { %1030 = vmatpush.msra.mxu2 %v1689_v17  ;;  %1144 = vmatpush.msra.mxu3 %v1721_v18 }
  0xda   : > { %1257 = vmatpush.msra.mxu0 %v1754_v19  ;;  %914 = vmatpush.msra.mxu1 %v1657_v22 }
  0xdc   : > { %589 = vmatmul.f32.gmra.mxu2 %v2707_v35  ;;  %1258 = vmatpush.msra.mxu0 %v1753_v33 }
  0xdd   : > { %491 = vmatmul.f32.gmra.mxu1 %v2667_v21 }
  0xdf   : > { %705 = vmatmul.f32.gmra.mxu3 %v2711_v36  ;;  %816 = vmatmul.f32.gmra.mxu0 %v2462_v2 }
  0xe4   : > { %592 = vmatmul.f32.gmra.mxu2 %v2729_v41 }
  0xe5   : > { %494 = vmatmul.f32.gmra.mxu1 %v2689_v29 }
  0xe7   : > { %708 = vmatmul.f32.gmra.mxu3 %v2733_v42  ;;  %819 = vmatmul.f32.gmra.mxu0 %v2298_v13 }
  0xec   : > { %595 = vmatmul.f32.gmra.mxu2 %v2751_v49 }
  0xed   : > { %497 = vmatmul.f32.gmra.mxu1 %v2711_v36 }
  0xef   : > { %711 = vmatmul.f32.gmra.mxu3 %v2755_v50  ;;  %822 = vmatmul.f32.gmra.mxu0 %v2341_v27 }
  0xf4   : > { %598 = vmatmul.f32.gmra.mxu2 %v2773_v56 }
  0xf5   : > { %500 = vmatmul.f32.gmra.mxu1 %v2733_v42 }
  0xf7   : > { %714 = vmatmul.f32.gmra.mxu3 %v2777_v57  ;;  %825 = vmatmul.f32.gmra.mxu0 %v2398_v45 }
  0xfc   : > { %601 = vmatmul.f32.gmra.mxu2 %v2795_v63 }
  0xfd   : > { %503 = vmatmul.f32.gmra.mxu1 %v2755_v50 }
  0xff   : > { %717 = vmatmul.f32.gmra.mxu3 %v2799_v0  ;;  %828 = vmatmul.f32.gmra.mxu0 %v2459_v1 }
 0x104   : > { %604 = vmatmul.f32.gmra.mxu2 %v2817_v9  ;;  %v2823_v15 = vpop.f32.mrf.mxu1 }
 0x105   : > { %506 = vmatmul.f32.gmra.mxu1 %v2777_v57 }
 0x107   : > { %720 = vmatmul.f32.gmra.mxu3 %v2821_v10  ;;  %831 = vmatmul.f32.gmra.mxu0 %v2307_v16 }
 0x10a   : > { %v2843_v16 = vpop.f32.mrf.mxu2  ;;  %v409_v31 = vpop.f32.mrf.mxu0 }
 0x10c   : > { %607 = vmatmul.f32.gmra.mxu2 %v2841_v23  ;;  %v2849_v25 = vpop.f32.mrf.mxu3 }
 0x10d   : > { %509 = vmatmul.f32.gmra.mxu1 %v2799_v0  ;;  %v2852_v30 = vpop.f32.mrf.mxu1 }
 0x10f   : > { %723 = vmatmul.f32.gmra.mxu3 %v2847_v24  ;;  %834 = vmatmul.f32.gmra.mxu0 %v2357_v32 }
 0x112   : > { %v2862_v37 = vpop.f32.mrf.mxu2 }
 0x114   : > { %610 = vmatmul.f32.gmra.mxu2 %v2860_v34 }
 0x115   : > { %512 = vmatmul.f32.gmra.mxu1 %v2821_v10  ;;  %v2869_v39 = vpop.f32.mrf.mxu3 }
 0x116   : > { %v2871_v32 = vpop.f32.mrf.mxu1 }
 0x117   : > { %726 = vmatmul.f32.gmra.mxu3 %v2866_v38  ;;  %837 = vmatmul.f32.gmra.mxu0 %v2419_v52  ;;  %v2892_v52 = vld [vmem:[%s2292_s21 + $0xb2] sm:$0xff] }
 0x118   : > { %v412_v40 = vpop.f32.mrf.mxu0 }
 0x11b   : > { %v2878_v44 = vpop.f32.mrf.mxu2 }
 0x11c   : > { %613 = vmatmul.f32.gmra.mxu2 %v2876_v43 }
 0x11d   : > { %515 = vmatmul.f32.gmra.mxu1 %v2847_v24 }
 0x11f   : > { %729 = vmatmul.f32.gmra.mxu3 %v2882_v47  ;;  %840 = vmatmul.f32.gmra.mxu0 %v2482_v8  ;;  %v2887_v48 = vpop.f32.mrf.mxu3 }
 0x120   : > { %v2889_v51 = vpop.f32.mrf.mxu1 }
 0x122   : > { %v415_v53 = vpop.f32.mrf.mxu0 }
 0x124   : > { %616 = vmatmul.f32.gmra.mxu2 %v2892_v52 }
 0x125   : > { %518 = vmatmul.f32.gmra.mxu1 %v2866_v38  ;;  %v2902_v58 = vpop.f32.mrf.mxu2 }
 0x127   : > { %732 = vmatmul.f32.gmra.mxu3 %v2896_v54  ;;  %843 = vmatmul.f32.gmra.mxu0 %v2899_v55 }
 0x129   : > { %v2906_v59 = vpop.f32.mrf.mxu3 }
 0x12a   : > { %v474_v61 = vpop.f32.mrf.mxu1 }
 0x12b   : > { %v475_v5 = vadd.f32 %v474_v61, %v409_v31 }
 0x12c   : > { %v418_v62 = vpop.f32.mrf.mxu0  ;;  %1031 = vmatmul.f32.vlgmr.msra.gmra.mxu2 %v2619_v3 }
 0x12d   : > { %915 = vmatmul.f32.vlgmr.msra.gmra.mxu1 %v2603_v60 }
 0x12f   : > { %846 = vmatmul.f32.gmra.mxu0 %v2910_v4  ;;  %1145 = vmatmul.f32.vlgmr.msra.gmra.mxu3 %v2295_v12  ;;  %v572_v6 = vpop.f32.mrf.mxu2 }
 0x130   : > { %v620_v7 = vadd.f32 %v572_v6, %v475_v5 }
 0x132   : > { %v477_v17 = vpop.f32.mrf.mxu1  ;;  %v688_v18 = vpop.f32.mrf.mxu3 }
 0x133   : > { %v2915_v19 = vadd.f32 %v688_v18, %v620_v7  ;;  %v478_v3 = vadd.f32 %v477_v17, %v412_v40 }
 0x134   : > { %v2917_v22 = vpop.f32.mrf.mxu0  ;;  %1034 = vmatmul.f32.gmra.mxu2 %v2646_v14 }
 0x135   : > { %918 = vmatmul.f32.gmra.mxu1 %v2642_v11 }
 0x137   : > { %1148 = vmatmul.f32.gmra.mxu3 %v2344_v28  ;;  %1259 = vmatmul.f32.vlgmr.msra.gmra.mxu0 %v2663_v20  ;;  %v575_v60 = vpop.f32.mrf.mxu2 }
 0x138   : > { %v621_v31 = vadd.f32 %v575_v60, %v478_v3 }
 0x13a   : > { %v480_v12 = vpop.f32.mrf.mxu1  ;;  %v691_v33 = vpop.f32.mrf.mxu3 }
 0x13b   : > { %v2923_v61 = vadd.f32 %v691_v33, %v621_v31  ;;  %v481_v14 = vadd.f32 %v480_v12, %v415_v53 }
 0x13c   : > { %v2925_v5 = vpop.f32.mrf.mxu0  ;;  %1037 = vmatmul.f32.gmra.mxu2 %v2667_v21 }
 0x13d   : > { %921 = vmatmul.f32.gmra.mxu1 %v2663_v20 }
 0x13f   : > { %1151 = vmatmul.f32.gmra.mxu3 %v2401_v46  ;;  %1262 = vmatmul.f32.gmra.mxu0 %v2685_v26  ;;  %v578_v28 = vpop.f32.mrf.mxu2 }
 0x140   : > { %v622_v11 = vadd.f32 %v578_v28, %v481_v14 }
 0x142   : > { %v483_v40 = vpop.f32.mrf.mxu1  ;;  %v694_v6 = vpop.f32.mrf.mxu3 }
 0x143   : > { %v2931_v7 = vadd.f32 %v694_v6, %v622_v11  ;;  %v484_v21 = vadd.f32 %v483_v40, %v418_v62 }
 0x144   : > { %v2933_v17 = vpop.f32.mrf.mxu0  ;;  %1040 = vmatmul.f32.gmra.mxu2 %v2689_v29 }
 0x145   : > { %924 = vmatmul.f32.gmra.mxu1 %v2685_v26 }
 0x147   : > { %1154 = vmatmul.f32.gmra.mxu3 %v2462_v2  ;;  %1265 = vmatmul.f32.gmra.mxu0 %v2707_v35  ;;  %v581_v46 = vpop.f32.mrf.mxu2 }
 0x148   : > { %v623_v20 = vadd.f32 %v581_v46, %v484_v21 }
 0x14a   : > { %v486_v53 = vpop.f32.mrf.mxu1  ;;  %v697_v18 = vpop.f32.mrf.mxu3 }
 0x14b   : > { %v2939_v3 = vadd.f32 %v697_v18, %v623_v20  ;;  %v487_v29 = vadd.f32 %v486_v53, %v2823_v15 }
 0x14c   : > { %v2941_v60 = vpop.f32.mrf.mxu0  ;;  %1043 = vmatmul.f32.gmra.mxu2 %v2711_v36 }
 0x14d   : > { %927 = vmatmul.f32.gmra.mxu1 %v2707_v35 }
 0x14f   : > { %1157 = vmatmul.f32.gmra.mxu3 %v2298_v13  ;;  %1268 = vmatmul.f32.gmra.mxu0 %v2729_v41  ;;  %v584_v2 = vpop.f32.mrf.mxu2 }
 0x150   : > { %v624_v26 = vadd.f32 %v584_v2, %v487_v29 }
 0x152   : > { %v489_v62 = vpop.f32.mrf.mxu1  ;;  %v700_v31 = vpop.f32.mrf.mxu3 }
 0x153   : > { %v2948_v12 = vadd.f32 %v700_v31, %v624_v26  ;;  %v490_v35 = vadd.f32 %v489_v62, %v2852_v30  ;;  %v1714_v62 = vld [vmem:[%s2292_s21 + $0x99] sm:$0xff] }
 0x154   : > { %v2950_v33 = vpop.f32.mrf.mxu0  ;;  %1046 = vmatmul.f32.gmra.mxu2 %v2733_v42 }
 0x155   : > { %930 = vmatmul.f32.gmra.mxu1 %v2729_v41 }
 0x157   : > { %1160 = vmatmul.f32.gmra.mxu3 %v2341_v27  ;;  %1271 = vmatmul.f32.gmra.mxu0 %v2751_v49  ;;  %v587_v13 = vpop.f32.mrf.mxu2 }
 0x158   : > { %v625_v36 = vadd.f32 %v587_v13, %v490_v35 }
 0x15a   : > { %v492_v15 = vpop.f32.mrf.mxu1  ;;  %v703_v14 = vpop.f32.mrf.mxu3 }
 0x15b   : > { %v2957_v28 = vadd.f32 %v703_v14, %v625_v36  ;;  %v493_v41 = vadd.f32 %v492_v15, %v2871_v32  ;;  %v1715_v14 = vld [vmem:[%s2292_s21 + $0xa9] sm:$0xff] }
 0x15c   : > { %v2959_v11 = vpop.f32.mrf.mxu0  ;;  %1049 = vmatmul.f32.gmra.mxu2 %v2755_v50 }
 0x15d   : > { %933 = vmatmul.f32.gmra.mxu1 %v2751_v49 }
 0x15f   : > { %1163 = vmatmul.f32.gmra.mxu3 %v2398_v45  ;;  %1274 = vmatmul.f32.gmra.mxu0 %v2773_v56  ;;  %v590_v27 = vpop.f32.mrf.mxu2 }
 0x160   : > { %v626_v42 = vadd.f32 %v590_v27, %v493_v41 }
 0x162   : > { %v495_v30 = vpop.f32.mrf.mxu1  ;;  %v706_v40 = vpop.f32.mrf.mxu3 }
 0x163   : > { %v2966_v6 = vadd.f32 %v706_v40, %v626_v42  ;;  %v496_v49 = vadd.f32 %v495_v30, %v2889_v51 }
 0x164   : > { %v2968_v21 = vpop.f32.mrf.mxu0  ;;  %1052 = vmatmul.f32.gmra.mxu2 %v2777_v57  ;;  %v1713_v57 = vld [vmem:[%s2292_s21 + $0x91] sm:$0xff] }
 0x165   : > { %936 = vmatmul.f32.gmra.mxu1 %v2773_v56 }
 0x167   : > { %1166 = vmatmul.f32.gmra.mxu3 %v2459_v1  ;;  %1277 = vmatmul.f32.gmra.mxu0 %v2795_v63  ;;  %v593_v45 = vpop.f32.mrf.mxu2 }
 0x168   : > { %v627_v50 = vadd.f32 %v593_v45, %v496_v49 }
 0x16a   : > { %v498_v32 = vpop.f32.mrf.mxu1  ;;  %v709_v46 = vpop.f32.mrf.mxu3 }
 0x16b   : > { %v2975_v20 = vadd.f32 %v709_v46, %v627_v50  ;;  %v499_v56 = vadd.f32 %v498_v32, %v2843_v16 }
 0x16c   : > { %v2977_v53 = vpop.f32.mrf.mxu0  ;;  %1055 = vmatmul.f32.gmra.mxu2 %v2799_v0 }
 0x16d   : > { %939 = vmatmul.f32.gmra.mxu1 %v2795_v63 }
 0x16f   : > { %1169 = vmatmul.f32.gmra.mxu3 %v1713_v57  ;;  %1280 = vmatmul.f32.gmra.mxu0 %v2817_v9  ;;  %v596_v1 = vpop.f32.mrf.mxu2 }
 0x170   : > { %v628_v51 = vadd.f32 %v596_v1, %v499_v56 }
 0x172   : > { %v501_v18 = vpop.f32.mrf.mxu1  ;;  %v712_v29 = vpop.f32.mrf.mxu3 }
 0x173   : > { %v744_v2 = vadd.f32 %v712_v29, %v628_v51  ;;  %v502_v63 = vadd.f32 %v501_v18, %v2862_v37  ;;  %v1687_v29 = vld [vmem:[%s2292_s21 + $0xd8] sm:$0xff] }
 0x174   : > { %v826_v26 = vpop.f32.mrf.mxu0  ;;  %1058 = vmatmul.f32.gmra.mxu2 %v2821_v10 }
 0x175   : > { %v2986_v31 = vadd.f32 %v826_v26, %v744_v2  ;;  %942 = vmatmul.f32.gmra.mxu1 %v2817_v9 }
 0x177   : > { %1172 = vmatmul.f32.gmra.mxu3 %v1714_v62  ;;  %1283 = vmatmul.f32.gmra.mxu0 %v2841_v23  ;;  %v599_v0 = vpop.f32.mrf.mxu2 }
 0x178   : > { %v629_v16 = vadd.f32 %v599_v0, %v502_v63  ;;  %v1750_v0 = vld [vmem:[%s2292_s21 + $0xca] sm:$0xff] }
 0x17a   : > { %v504_v35 = vpop.f32.mrf.mxu1  ;;  %v715_v13 = vpop.f32.mrf.mxu3 }
 0x17b   : > { %v745_v36 = vadd.f32 %v715_v13, %v629_v16  ;;  %v505_v9 = vadd.f32 %v504_v35, %v2878_v44  ;;  %v1688_v35 = vld [vmem:[%s2292_s21 + $0xe0] sm:$0xff] }
 0x17c   : > { %v829_v15 = vpop.f32.mrf.mxu0  ;;  %1061 = vmatmul.f32.gmra.mxu2 %v2847_v24 }
 0x17d   : > { %v2993_v10 = vadd.f32 %v829_v15, %v745_v36  ;;  %945 = vmatmul.f32.gmra.mxu1 %v2841_v23 }
 0x17f   : > { %1175 = vmatmul.f32.gmra.mxu3 %v1715_v14  ;;  %1286 = vmatmul.f32.gmra.mxu0 %v2860_v34  ;;  %v602_v37 = vpop.f32.mrf.mxu2 }
 0x180   : > { %v630_v41 = vadd.f32 %v602_v37, %v505_v9  ;;  %v1720_v9 = vld [vmem:[%s2292_s21 + $0xe1] sm:$0xff] }
 0x181   : > { %v1751_v37 = vld [vmem:[%s2292_s21 + $0xda] sm:$0xff] }
 0x182   : > { %v507_v27 = vpop.f32.mrf.mxu1  ;;  %v718_v42 = vpop.f32.mrf.mxu3 }
 0x183   : > { %v746_v30 = vadd.f32 %v718_v42, %v630_v41  ;;  %v508_v24 = vadd.f32 %v507_v27, %v2902_v58 }
 0x184   : > { %v832_v40 = vpop.f32.mrf.mxu0  ;;  %1064 = vmatmul.f32.gmra.mxu2 %v2866_v38 }
 0x185   : > { %v2999_v49 = vadd.f32 %v832_v40, %v746_v30  ;;  %948 = vmatmul.f32.gmra.mxu1 %v2860_v34 }
 0x187   : > { %1178 = vmatmul.f32.gmra.mxu3 %v2482_v8  ;;  %1289 = vmatmul.f32.gmra.mxu0 %v2876_v43  ;;  %v605_v23 = vpop.f32.mrf.mxu2 }
 0x188   : > { %v631_v44 = vadd.f32 %v605_v23, %v508_v24  ;;  %v850_v23 = vadd.f32 %v2917_v22, %v2915_v19 }
 0x18a   : > { %v510_v45 = vpop.f32.mrf.mxu1  ;;  %v721_v50 = vpop.f32.mrf.mxu3 }
 0x18b   : > { %v747_v32 = vadd.f32 %v721_v50, %v631_v44  ;;  %v511_v34 = vadd.f32 %v510_v45, %v2849_v25  ;;  %v1752_v45 = vld [vmem:[%s2292_s21 + $0xe2] sm:$0xff] }
 0x18c   : > { %v835_v46 = vpop.f32.mrf.mxu0  ;;  %1067 = vmatmul.f32.gmra.mxu2 %v2882_v47  ;;  %v1749_v47 = vld [vmem:[%s2292_s21 + $0xc2] sm:$0xff] }
 0x18d   : > { %v3006_v38 = vadd.f32 %v835_v46, %v747_v32  ;;  %951 = vmatmul.f32.gmra.mxu1 %v2876_v43 }
 0x18f   : > { %1181 = vmatmul.f32.gmra.mxu3 %v2899_v55  ;;  %1292 = vmatmul.f32.gmra.mxu0 %v2892_v52  ;;  %v608_v8 = vpop.f32.mrf.mxu2 }
 0x190   : > { %v632_v58 = vadd.f32 %v608_v8, %v511_v34 }
 0x192   : > { %v513_v57 = vpop.f32.mrf.mxu1  ;;  %v724_v56 = vpop.f32.mrf.mxu3 }
 0x193   : > { %v748_v1 = vadd.f32 %v724_v56, %v632_v58  ;;  %v514_v25 = vadd.f32 %v513_v57, %v2869_v39  ;;  %v851_v57 = vadd.f32 %v2925_v5, %v2923_v61 }
 0x194   : > { %v838_v51 = vpop.f32.mrf.mxu0  ;;  %1070 = vmatmul.f32.gmra.mxu2 %v2896_v54  ;;  %v1719_v54 = vld [vmem:[%s2292_s21 + $0xd9] sm:$0xff]  ;;  %s1778_s21 = sshll.u32 %s1980_s12, 4 }
 0x195   : > { %v3014_v18 = vadd.f32 %v838_v51, %v748_v1  ;;  %954 = vmatmul.f32.gmra.mxu1 %v2892_v52  ;;  %s1353_s4 = sadd.s32 %s1778_s21, %s1772_s30 }
 0x196   : > { %s1773_s5 = sshll.u32 %s1353_s4, 3 }
 0x197   : > { %1184 = vmatmul.f32.gmra.mxu3 %v2910_v4  ;;  %1295 = vmatmul.f32.gmra.mxu0 %v1749_v47  ;;  %v611_v43 = vpop.f32.mrf.mxu2  ;;  %s1355_s13 = scalar_lea.hbm %s3122_s2, %s1773_s5 }
 0x198   : > { %v633_v55 = vadd.f32 %v611_v43, %v514_v25  ;;  %s1358_s3 = sshll.u32 %s1355_s13, 4  ;;  %s1359_s3 = int_to_ptr.hbm [resolvable:$true] %s1358_s3 }
 0x199   : > { %s1914_s18 = sshra.s32 %s1359_s3, 4  ;;  %s1915_s18 = int_to_ptr.hbm [resolvable:$true] %s1914_s18 }
 0x19a   : > { %v516_v2 = vpop.f32.mrf.mxu1  ;;  %v727_v26 = vpop.f32.mrf.mxu3  ;;  %s1916_s24 = scalar_lea.hbm %s1915_s18, 128  ;;  %p1921_p6 = scmp.lt.s32.totalorder %s1915_s18, %s3122_s2 }
 0x19b   : > { %v749_v62 = vadd.f32 %v727_v26, %v633_v55  ;;  %v517_v39 = vadd.f32 %v516_v2, %v2887_v48  ;;  %v852_v55 = vadd.f32 %v2933_v17, %v2931_v7  ;;  %p1917_p2 = scmp.ne.s32.totalorder %s1915_s18, %s1916_s24  ;;  %p1922_p7 = scmp.lt.s32.totalorder %s1920_s29, %s1916_s24 }
 0x19c   : > { %v841_v63 = vpop.f32.mrf.mxu0  ;;  %1073 = vmatmul.f32.gmra.mxu2 %v1687_v29 }
 0x19d   : > { %v3022_v16 = vadd.f32 %v841_v63, %v749_v62  ;;  %957 = vmatmul.f32.gmra.mxu1 %v1749_v47  ;;  %p1918_p4 = pnand %p1917_p2, %p2066_p3  ;;  %p1923_p9 = por %p1922_p7, %p1921_p6 }
 0x19f   : > { %1187 = vmatmul.f32.gmra.mxu3 %v1719_v54  ;;  %1298 = vmatmul.f32.gmra.mxu0 %v1750_v0  ;;  %v614_v52 = vpop.f32.mrf.mxu2  ;;  %p1919_p5 = pneg %p1918_p4 }
 0x1a0   : > { %v634_v4 = vadd.f32 %v614_v52, %v517_v39 }
 0x1a1   : > { %p1924_p10 = pnand %p1923_p9, %p1919_p5 }
 0x1a2   : > { %v519_v13 = vpop.f32.mrf.mxu1  ;;  %v730_v36 = vpop.f32.mrf.mxu3 }
 0x1a3   : > { %v750_v15 = vadd.f32 %v730_v36, %v634_v4  ;;  %v520_v27 = vadd.f32 %v519_v13, %v2906_v59 }
 0x1a4   : > { %v844_v14 = vpop.f32.mrf.mxu0  ;;  %1076 = vmatmul.f32.gmra.mxu2 %v1688_v35 }
 0x1a5   : > { %v3028_v41 = vadd.f32 %v844_v14, %v750_v15  ;;  %960 = vmatmul.f32.gmra.mxu1 %v1750_v0  ;;  %v853_v0 = vadd.f32 %v2941_v60, %v2939_v3  ;;  %v854_v15 = vadd.f32 %v2950_v33, %v2948_v12 }
 0x1a7   : > { %1190 = vmatmul.f32.gmra.mxu3 %v1720_v9  ;;  %1301 = vmatmul.f32.gmra.mxu0 %v1751_v37  ;;  %v617_v48 = vpop.f32.mrf.mxu2 }
 0x1a8   : > { %v635_v42 = vadd.f32 %v617_v48, %v520_v27 }
 0x1aa   : > { %v733_v30 = vpop.f32.mrf.mxu3  ;;  %v916_v40 = vpop.f32.mrf.mxu1 }
 0x1ab   : > { %v751_v24 = vadd.f32 %v733_v30, %v635_v42  ;;  %v964_v32 = vadd.f32 %v916_v40, %v850_v23  ;;  %v855_v30 = vadd.f32 %v2959_v11, %v2957_v28 }
 0x1ac   : > { %v847_v44 = vpop.f32.mrf.mxu0 }
 0x1ad   : > { %v3034_v50 = vadd.f32 %v847_v44, %v751_v24 }
 0x1af   : > { %1304 = vmatmul.f32.gmra.mxu0 %v1752_v45  ;;  %v1032_v46 = vpop.f32.mrf.mxu2 }
 0x1b0   : > { %v1080_v34 = vadd.f32 %v1032_v46, %v964_v32  ;;  %v856_v46 = vadd.f32 %v2968_v21, %v2966_v6 }
 0x1b2   : > { %v919_v59 = vpop.f32.mrf.mxu1  ;;  %v1146_v8 = vpop.f32.mrf.mxu3 }
 0x1b3   : > { %v1194_v58 = vadd.f32 %v1146_v8, %v1080_v34  ;;  %v965_v51 = vadd.f32 %v919_v59, %v851_v57 }
 0x1b4   : > { %v1260_v56 = vpop.f32.mrf.mxu0 }
 0x1b5   : > { %v1308_v1 = vadd.f32 %v1260_v56, %v1194_v58 }
 0x1b7   : > { %1324 = vst [vmem:[%s2094_s7] sm:$0xff] %v1308_v1  ;;  %v1035_v19 = vpop.f32.mrf.mxu2  ;;  %v857_v1 = vadd.f32 %v2977_v53, %v2975_v20 }
 0x1b8   : > { %v1081_v22 = vadd.f32 %v1035_v19, %v965_v51 }
 0x1ba   : > { %v922_v47 = vpop.f32.mrf.mxu1  ;;  %v1149_v25 = vpop.f32.mrf.mxu3 }
 0x1bb   : > { %v1195_v43 = vadd.f32 %v1149_v25, %v1081_v22  ;;  %v966_v26 = vadd.f32 %v922_v47, %v852_v55 }
 0x1bc   : > { %v1263_v29 = vpop.f32.mrf.mxu0 }
 0x1bd   : > { %v1309_v2 = vadd.f32 %v1263_v29, %v1195_v43 }
 0x1bf   : > { %1325 = vst [vmem:[%s2094_s7 + $0x8] sm:$0xff] %v1309_v2  ;;  %v1038_v62 = vpop.f32.mrf.mxu2 }
 0x1c0   : > { %v1082_v63 = vadd.f32 %v1038_v62, %v966_v26 }
 0x1c2   : > { %v925_v61 = vpop.f32.mrf.mxu1  ;;  %v1152_v5 = vpop.f32.mrf.mxu3 }
 0x1c3   : > { %v1196_v54 = vadd.f32 %v1152_v5, %v1082_v63  ;;  %v967_v4 = vadd.f32 %v925_v61, %v853_v0 }
 0x1c4   : > { %v1266_v39 = vpop.f32.mrf.mxu0 }
 0x1c5   : > { %v1310_v52 = vadd.f32 %v1266_v39, %v1196_v54 }
 0x1c7   : > { %1326 = vst [vmem:[%s2094_s7 + $0x10] sm:$0xff] %v1310_v52  ;;  %v1041_v35 = vpop.f32.mrf.mxu2 }
 0x1c8   : > { %v1083_v13 = vadd.f32 %v1041_v35, %v967_v4 }
 0x1ca   : > { %v928_v7 = vpop.f32.mrf.mxu1  ;;  %v1155_v17 = vpop.f32.mrf.mxu3 }
 0x1cb   : > { %v1197_v36 = vadd.f32 %v1155_v17, %v1083_v13  ;;  %v968_v37 = vadd.f32 %v928_v7, %v854_v15 }
 0x1cc   : > { %v1269_v14 = vpop.f32.mrf.mxu0 }
 0x1cd   : > { %v1311_v9 = vadd.f32 %v1269_v14, %v1197_v36 }
 0x1cf   : > { %1327 = vst [vmem:[%s2094_s7 + $0x18] sm:$0xff] %v1311_v9  ;;  %v1044_v27 = vpop.f32.mrf.mxu2 }
 0x1d0   : > { %v1084_v48 = vadd.f32 %v1044_v27, %v968_v37 }
 0x1d2   : > { %v931_v3 = vpop.f32.mrf.mxu1  ;;  %v1158_v60 = vpop.f32.mrf.mxu3 }
 0x1d3   : > { %v1198_v42 = vadd.f32 %v1158_v60, %v1084_v48  ;;  %v969_v23 = vadd.f32 %v931_v3, %v855_v30 }
 0x1d4   : > { %v1272_v40 = vpop.f32.mrf.mxu0 }
 0x1d5   : > { %v1312_v24 = vadd.f32 %v1272_v40, %v1198_v42 }
 0x1d7   : > { %1328 = vst [vmem:[%s2094_s7 + $0x20] sm:$0xff] %v1312_v24  ;;  %v1047_v44 = vpop.f32.mrf.mxu2 }
 0x1d8   : > { %v1085_v45 = vadd.f32 %v1047_v44, %v969_v23 }
 0x1da   : > { %v934_v12 = vpop.f32.mrf.mxu1  ;;  %v1161_v33 = vpop.f32.mrf.mxu3 }
 0x1db   : > { %v1199_v32 = vadd.f32 %v1161_v33, %v1085_v45  ;;  %v970_v8 = vadd.f32 %v934_v12, %v856_v46 }
 0x1dc   : > { %v1275_v34 = vpop.f32.mrf.mxu0 }
 0x1dd   : > { %v1313_v59 = vadd.f32 %v1275_v34, %v1199_v32 }
 0x1df   : > { %1329 = vst [vmem:[%s2094_s7 + $0x28] sm:$0xff] %v1313_v59  ;;  %v1050_v58 = vpop.f32.mrf.mxu2 }
 0x1e0   : > { %v1086_v57 = vadd.f32 %v1050_v58, %v970_v8 }
 0x1e2   : > { %v937_v28 = vpop.f32.mrf.mxu1  ;;  %v1164_v11 = vpop.f32.mrf.mxu3 }
 0x1e3   : > { %v1200_v56 = vadd.f32 %v1164_v11, %v1086_v57  ;;  %v971_v22 = vadd.f32 %v937_v28, %v857_v1 }
 0x1e4   : > { %v1278_v51 = vpop.f32.mrf.mxu0 }
 0x1e5   : > { %v1314_v19 = vadd.f32 %v1278_v51, %v1200_v56 }
 0x1e7   : > { %1330 = vst [vmem:[%s2094_s7 + $0x30] sm:$0xff] %v1314_v19  ;;  %v1053_v47 = vpop.f32.mrf.mxu2 }
 0x1e8   : > { %v1087_v25 = vadd.f32 %v1053_v47, %v971_v22 }
 0x1ea   : > { %v940_v6 = vpop.f32.mrf.mxu1  ;;  %v1167_v21 = vpop.f32.mrf.mxu3 }
 0x1eb   : > { %v1201_v43 = vadd.f32 %v1167_v21, %v1087_v25  ;;  %v972_v2 = vadd.f32 %v940_v6, %v2986_v31 }
 0x1ec   : > { %v1281_v55 = vpop.f32.mrf.mxu0 }
 0x1ed   : > { %v1315_v29 = vadd.f32 %v1281_v55, %v1201_v43 }
 0x1ef   : > { %1331 = vst [vmem:[%s2094_s7 + $0x38] sm:$0xff] %v1315_v29  ;;  %v1056_v26 = vpop.f32.mrf.mxu2 }
 0x1f0   : > { %v1088_v62 = vadd.f32 %v1056_v26, %v972_v2 }
 0x1f2   : > { %v943_v63 = vpop.f32.mrf.mxu1  ;;  %v1170_v20 = vpop.f32.mrf.mxu3 }
 0x1f3   : > { %v1202_v53 = vadd.f32 %v1170_v20, %v1088_v62  ;;  %v973_v54 = vadd.f32 %v943_v63, %v2993_v10 }
 0x1f4   : > { %v1284_v61 = vpop.f32.mrf.mxu0 }
 0x1f5   : > { %v1316_v5 = vadd.f32 %v1284_v61, %v1202_v53 }
 0x1f7   : > { %1332 = vst [vmem:[%s2094_s7 + $0x40] sm:$0xff] %v1316_v5  ;;  %v1059_v0 = vpop.f32.mrf.mxu2 }
 0x1f8   : > { %v1089_v39 = vadd.f32 %v1059_v0, %v973_v54 }
 0x1fa   : > { %v946_v52 = vpop.f32.mrf.mxu1  ;;  %v1173_v4 = vpop.f32.mrf.mxu3 }
 0x1fb   : > { %v1203_v35 = vadd.f32 %v1173_v4, %v1089_v39  ;;  %v974_v7 = vadd.f32 %v946_v52, %v2999_v49 }
 0x1fc   : > { %v1287_v13 = vpop.f32.mrf.mxu0 }
 0x1fd   : > { %v1317_v31 = vadd.f32 %v1287_v13, %v1203_v35 }
 0x1ff   : > { %1333 = vst [vmem:[%s2094_s7 + $0x48] sm:$0xff] %v1317_v31  ;;  %v1062_v17 = vpop.f32.mrf.mxu2 }
 0x200   : > { %v1090_v36 = vadd.f32 %v1062_v17, %v974_v7 }
 0x202   : > { %v949_v15 = vpop.f32.mrf.mxu1  ;;  %v1176_v14 = vpop.f32.mrf.mxu3 }
 0x203   : > { %v1204_v9 = vadd.f32 %v1176_v14, %v1090_v36  ;;  %v975_v27 = vadd.f32 %v949_v15, %v3006_v38 }
 0x204   : > { %v1290_v37 = vpop.f32.mrf.mxu0 }
 0x205   : > { %v1318_v10 = vadd.f32 %v1290_v37, %v1204_v9 }
 0x207   : > { %1334 = vst [vmem:[%s2094_s7 + $0x50] sm:$0xff] %v1318_v10  ;;  %v1065_v48 = vpop.f32.mrf.mxu2 }
 0x208   : > { %v1091_v3 = vadd.f32 %v1065_v48, %v975_v27 }
 0x20a   : > { %v952_v60 = vpop.f32.mrf.mxu1  ;;  %v1179_v42 = vpop.f32.mrf.mxu3 }
 0x20b   : > { %v1205_v30 = vadd.f32 %v1179_v42, %v1091_v3  ;;  %v976_v24 = vadd.f32 %v952_v60, %v3014_v18 }
 0x20c   : > { %v1293_v40 = vpop.f32.mrf.mxu0 }
 0x20d   : > { %v1319_v49 = vadd.f32 %v1293_v40, %v1205_v30 }
 0x20f   : > { %1335 = vst [vmem:[%s2094_s7 + $0x58] sm:$0xff] %v1319_v49  ;;  %v1068_v23 = vpop.f32.mrf.mxu2 }
 0x210   : > { %v1092_v44 = vadd.f32 %v1068_v23, %v976_v24 }
 0x212   : > { %v955_v45 = vpop.f32.mrf.mxu1  ;;  %v1182_v12 = vpop.f32.mrf.mxu3 }
 0x213   : > { %v1206_v38 = vadd.f32 %v1182_v12, %v1092_v44  ;;  %v977_v46 = vadd.f32 %v955_v45, %v3022_v16 }
 0x214   : > { %v1296_v33 = vpop.f32.mrf.mxu0 }
 0x215   : > { %v1320_v32 = vadd.f32 %v1296_v33, %v1206_v38 }
 0x217   : > { %1336 = vst [vmem:[%s2094_s7 + $0x60] sm:$0xff] %v1320_v32  ;;  %v1071_v34 = vpop.f32.mrf.mxu2 }
 0x218   : > { %v1093_v59 = vadd.f32 %v1071_v34, %v977_v46 }
 0x21a   : > { %v958_v8 = vpop.f32.mrf.mxu1  ;;  %v1185_v58 = vpop.f32.mrf.mxu3 }
 0x21b   : > { %v1207_v57 = vadd.f32 %v1185_v58, %v1093_v59  ;;  %v978_v11 = vadd.f32 %v958_v8, %v3028_v41 }
 0x21c   : > { %v1299_v18 = vpop.f32.mrf.mxu0 }
 0x21d   : > { %v1321_v28 = vadd.f32 %v1299_v18, %v1207_v57 }
 0x21f   : > { %1337 = vst [vmem:[%s2094_s7 + $0x68] sm:$0xff] %v1321_v28  ;;  %v1074_v56 = vpop.f32.mrf.mxu2 }
 0x220   : > { %v1094_v1 = vadd.f32 %v1074_v56, %v978_v11 }
 0x222   : > { %v1188_v51 = vpop.f32.mrf.mxu3  ;;  %v961_v16 = vpop.f32.mrf.mxu1 }
 0x223   : > { %v1208_v19 = vadd.f32 %v1188_v51, %v1094_v1  ;;  %v979_v25 = vadd.f32 %v961_v16, %v3034_v50 }
 0x224   : > { %v1302_v22 = vpop.f32.mrf.mxu0 }
 0x225   : > { %v1322_v47 = vadd.f32 %v1302_v22, %v1208_v19 }
 0x227   : > { %1338 = vst [vmem:[%s2094_s7 + $0x70] sm:$0xff] %v1322_v47  ;;  %v1077_v41 = vpop.f32.mrf.mxu2 }
 0x228   : > { %v1095_v6 = vadd.f32 %v1077_v41, %v979_v25 }
 0x22a   : > { %v1191_v21 = vpop.f32.mrf.mxu3 }
 0x22b   : > { %v1209_v43 = vadd.f32 %v1191_v21, %v1095_v6 }
 0x22c   : > { %v1305_v55 = vpop.f32.mrf.mxu0 }
 0x22d   : > { %v1323_v29 = vadd.f32 %v1305_v55, %v1209_v43 }
 0x22f   : > { %1339 = vst [vmem:[%s2094_s7 + $0x78] sm:$0xff] %v1323_v29 }
 0x230   : > { %1927 = shalt.err (!%p1924_p10)
}
 0x231   : > { %s1998_s28 = smov 128   ;;  %s1999_s7 = smov 8  }
 0x232   : > { %1827 = dma.vmem_to_hbm [thread:$0]  (%p2066_p3), %s1357_s17, 2048, %s1359_s3, %s1341_s6, %s1998_s28, %s1998_s28, %s1999_s7  }
 0x233 PF: > { %p1833_p11 = scmp.ge.s32.totalorder %s1996_s16, 2  ;;  %s1373_s4 = sand.u32 1, %s1968_s9  }
 0x234   : > { %s1374_s5 = scalar_lea.sflag [#allocation5], %s1373_s4 }
 0x235   : > { %p1830_p12 = pnand %p1833_p11, %p2075_p8 }
 0x237   : > { %p1831_p13 = pneg %p1830_p12 }
 0x239   : > { %1963 = dma.done.wait (%p1831_p13), %s1374_s5, 2048  }
 0x23a   : > { %1965 = vsyncadd (%p1831_p13), %s1374_s5, 4294965248  ;;  %s15_s16 = sadd.s32 1, %s1996_s16   ;;  %s3125_s9 = smov %s1972_s10 }
 0x23b   : > { %p12_p0 = scmp.ge.s32.totalorder %s15_s16, 6   ;;  %s3126_s10 = smov %s1976_s11 }
 0x23c   : > { %s3127_s11 = smov %s2084_s27  ;;  %s3128_s12 = smov %s1988_s14 }
 0x23d   : > { %s3129_s13 = smov %s1992_s15  ;;  %s3130_s14 = smov %s3133_s19 }
 0x23e   : > { %s3131_s15 = smov %s3137_s20  ;;  %14 = sbr.rel (!%p12_p0) target bundleno = 5 (0x5), region = 147 }
 0x243   :  { %1380 = vsyncpa [#allocation5], 1 }
 0x244   :  { %1382 = vsyncpa [#allocation5 + $0x1], 1 }
 0x245   :  { %1383 = vsyncmov [#allocation3] }
 0x248   :  { %s1384_s22 = vpop.sfrf %1383 }
 0x249   :  { %p1776_p3 = scmp.ne.s32.totalorder %s1384_s22, 0 }
 0x24b   :  { %1388 = shalt.err (%p1776_p3)  }
 0x24c   :  { %1390 = vsyncmov [#allocation3 + $0x1] }
 0x24f   :  { %s1391_s23 = vpop.sfrf %1390 }
 0x250   :  { %p1777_p8 = scmp.ne.s32.totalorder %s1391_s23, 0 }
 0x252   :  { %1395 = shalt.err (%p1777_p8)  }

</bundles_post_ra>
